<compile_context>
chip_gen: v5e
topology: v5e:2x2
jax: 0.10.0
libtpu: 0.0.40
codegen_flags: <defaults>
</compile_context>

<pallas_src>
import functools

import jax
import jax.numpy as jnp
from jax.experimental import pallas as pl
from jax.experimental.pallas import tpu as pltpu


def _interp_matrix(n_in, n_out):
    """(n_out, n_in) matrix for 1-D bilinear interpolation, align_corners=True
    (matches torch.nn.Upsample(mode='bilinear', align_corners=True))."""
    i = jnp.arange(n_out, dtype=jnp.float32)
    if n_in == 1 or n_out == 1:
        src = jnp.zeros((n_out,), jnp.float32)
    else:
        src = i * (n_in - 1) / (n_out - 1)
    i0 = jnp.clip(jnp.floor(src).astype(jnp.int32), 0, n_in - 1)
    i1 = jnp.clip(i0 + 1, 0, n_in - 1)
    frac = src - i0.astype(jnp.float32)
    rows = jnp.arange(n_out)
    m = jnp.zeros((n_out, n_in), jnp.float32)
    m = m.at[rows, i0].add(1.0 - frac)
    m = m.at[rows, i1].add(frac)
    return m


def _pick_row_tile(h2, w2, cap=128):
    """Largest multiple-of-8 divisor of h2 (<= cap) whose flattened lane width
    TH*W2 is a multiple of 128; falls back to the full h2."""
    best = None
    t = 8
    while t <= min(h2, cap):
        if h2 % t == 0 and (t * w2) % 128 == 0:
            best = t
        t += 8
    return best if best is not None else h2


# --------------------------------------------------------------------------
# Primary kernel: lane-dense / single-matmul formulation (review items 1-4).
# --------------------------------------------------------------------------
def _cfilter_kernel_flat(merg_ref, fd_ref, fs_ref, uh_ref, uwt_ref, wd_ref,
                         bd_ref, out_ref, *, mxu_dtype):
    # merg_ref (SMEM, (3,)): [w_avg, w_max, bias] of conv_merg (1x1, 2ch -> 1ch)
    c2 = fd_ref.shape[1]          # 2 * dim
    h_in = fd_ref.shape[2]        # H
    w_in = fd_ref.shape[3]        # W
    th = uh_ref.shape[0]          # output-row tile
    w2 = uwt_ref.shape[1]         # 2 * W

    fd = fd_ref[0].astype(mxu_dtype)                      # (2C, H, W) channel-major
    uh = uh_ref[...].astype(mxu_dtype)                    # (TH, H)  rows of this tile
    uwt = uwt_ref[...].astype(mxu_dtype)                  # (W, 2W)  pre-transposed

    # --- bilinear 2x upsample (align_corners=True), separable ----------------
    # rows: channel-batched MXU matmul (broadcast is hoisted, once per step).
    uh_b = jnp.broadcast_to(uh[None], (c2, th, h_in))
    a = jnp.einsum("koh,khw->kow", uh_b, fd,
                   preferred_element_type=jnp.float32)    # (2C, TH, W)
    # cols: ONE flat MXU matmul; then flatten spatial dims -> lane-dense rows.
    up = jnp.dot(a.reshape(c2 * th, w_in).astype(mxu_dtype), uwt,
                 preferred_element_type=jnp.float32)      # (2C*TH, 2W)
    up = up.reshape(c2, th * w2)                          # (2C, TH*2W)

    # --- channel avg/max pool + conv_merg (1x1, 2->1) + sigmoid --------------
    avg = jnp.mean(up, axis=0, keepdims=True)             # (1, TH*2W)
    mx = jnp.max(up, axis=0, keepdims=True)               # (1, TH*2W)
    z = merg_ref[0] * avg + merg_ref[1] * mx + merg_ref[2]
    weights = 1.0 / (1.0 + jnp.exp(-z))

    # --- conv_down (1x1, 2C -> C): ONE (C,2C)@(2C,TH*2W) MXU matmul ----------
    down = jnp.dot(wd_ref[...].astype(mxu_dtype), up.astype(mxu_dtype),
                   preferred_element_type=jnp.float32) + bd_ref[...]  # (C, TH*2W)

    # --- output = fs * weights + conv_down(up), lane-dense store -------------
    out_ref[0] = (fs_ref[0] * weights + down).astype(out_ref.dtype)


# --------------------------------------------------------------------------
# Fallback kernel: identical math, avoids the lane-merging reshape (used only
# if the primary kernel fails to lower, or when TH*W2 is not 128-aligned).
# --------------------------------------------------------------------------
def _cfilter_kernel_safe(merg_ref, fd_ref, fs_ref, uh_ref, uwt_ref, wd_ref,
                         bd_ref, out_ref, *, mxu_dtype):
    c2 = fd_ref.shape[1]
    h_in = fd_ref.shape[2]
    w_in = fd_ref.shape[3]
    th = uh_ref.shape[0]
    w2 = uwt_ref.shape[1]

    fd = fd_ref[0].astype(mxu_dtype)
    uh = uh_ref[...].astype(mxu_dtype)
    uwt = uwt_ref[...].astype(mxu_dtype)

    uh_b = jnp.broadcast_to(uh[None], (c2, th, h_in))
    a = jnp.einsum("koh,khw->kow", uh_b, fd,
                   preferred_element_type=jnp.float32)                 # (2C, TH, W)
    up = jnp.dot(a.reshape(c2 * th, w_in).astype(mxu_dtype), uwt,
                 preferred_element_type=jnp.float32).reshape(c2, th, w2)

    avg = jnp.mean(up, axis=0)                                         # (TH, 2W)
    mx = jnp.max(up, axis=0)
    z = merg_ref[0] * avg + merg_ref[1] * mx + merg_ref[2]
    weights = 1.0 / (1.0 + jnp.exp(-z))

    # conv_down as a broadcast multiply + channel reduction (VPU); compat path.
    wd = wd_ref[...]                                                   # (C, 2C)
    down = jnp.sum(wd[:, :, None, None] * up[None, :, :, :], axis=1)
    down = down + bd_ref[...][:, :, None]                              # (C, TH, 2W)

    out_ref[0] = (fs_ref[0] * weights[None] + down).astype(out_ref.dtype)


def cfilter_forward(fd, fs, params, *, row_tile=None, mxu_dtype=jnp.float32,
                    vmem_limit_bytes=None):
    """CFilter forward.  fd: (B, 2*dim, H, W), fs: (B, dim, 2H, 2W), NCHW.

    Pass mxu_dtype=jnp.bfloat16 on v6e/v7x for faster MXU matmuls (f32 accum).
    """
    w_merg = params["w_merg"]   # (1, 2, 1, 1)
    b_merg = params["b_merg"]   # (1,)
    w_down = params["w_down"]   # (dim, 2*dim, 1, 1)
    b_down = params["b_down"]   # (dim,)

    B, C2, H, W = fd.shape
    C = C2 // 2
    H2, W2 = 2 * H, 2 * W
    assert fs.shape == (B, C, H2, W2), (fs.shape, (B, C, H2, W2))

    TH = _pick_row_tile(H2, W2) if row_tile is None else row_tile
    assert H2 % TH == 0, (H2, TH)
    assert TH % 8 == 0 or TH == H2, TH
    NJ = H2 // TH

    UH = _interp_matrix(H, H2)             # (2H, H)
    UWT = _interp_matrix(W, W2).T          # (W, 2W) -- pre-transposed for the kernel

    merg = jnp.array([w_merg[0, 0, 0, 0], w_merg[0, 1, 0, 0], b_merg[0]],
                     dtype=jnp.float32)
    wd = w_down.reshape(C, C2).astype(jnp.float32)          # (C, 2C)
    bd = b_down.reshape(C, 1).astype(jnp.float32)           # (C, 1)

    cparams = pltpu.CompilerParams(
        dimension_semantics=("parallel", "parallel"),
        vmem_limit_bytes=vmem_limit_bytes)

    base_in_specs = [
        pl.BlockSpec(memory_space=pltpu.MemorySpace.SMEM),             # conv_merg scalars
        pl.BlockSpec((1, C2, H, W), lambda b, j: (b, 0, 0, 0)),        # fd (j-invariant)
        None,                                                          # fs (per variant)
        pl.BlockSpec((TH, H), lambda b, j: (j, 0)),                    # UH row tile
        pl.BlockSpec((W, W2), lambda b, j: (0, 0)),                    # UW^T
        pl.BlockSpec((C, C2), lambda b, j: (0, 0)),                    # conv_down weight
        pl.BlockSpec((C, 1), lambda b, j: (0, 0)),                     # conv_down bias
    ]

    def run_flat():
        fs_flat = fs.reshape(B, C, H2 * W2)    # free NCHW bitcast -> lane-dense tiles
        specs = list(base_in_specs)
        specs[2] = pl.BlockSpec((1, C, TH * W2), lambda b, j: (b, 0, j))
        out_flat = pl.pallas_call(
            functools.partial(_cfilter_kernel_flat, mxu_dtype=mxu_dtype),
            out_shape=jax.ShapeDtypeStruct((B, C, H2 * W2), jnp.float32),
            grid=(B, NJ),
            in_specs=specs,
            out_specs=pl.BlockSpec((1, C, TH * W2), lambda b, j: (b, 0, j)),
            compiler_params=cparams,
        )(merg, fd, fs_flat, UH, UWT, wd, bd)
        return out_flat.reshape(B, C, H2, W2)

    def run_safe():
        specs = list(base_in_specs)
        specs[2] = pl.BlockSpec((1, C, TH, W2), lambda b, j: (b, 0, j, 0))
        return pl.pallas_call(
            functools.partial(_cfilter_kernel_safe, mxu_dtype=mxu_dtype),
            out_shape=jax.ShapeDtypeStruct((B, C, H2, W2), jnp.float32),
            grid=(B, NJ),
            in_specs=specs,
            out_specs=pl.BlockSpec((1, C, TH, W2), lambda b, j: (b, 0, j, 0)),
            compiler_params=cparams,
        )(merg, fd, fs, UH, UWT, wd, bd)

    if (TH * W2) % 128 != 0:
        return run_safe()
    try:
        return run_flat()
    except Exception:
        # Mosaic build cannot lower the lane-merging reshape; use the safe path.
        return run_safe()


def cfilter_reference(fd, fs, params):
    """Pure-JAX reference mirroring the torch forward (for validation)."""
    B, C2, H, W = fd.shape
    C = C2 // 2
    UH = _interp_matrix(H, 2 * H)
    UW = _interp_matrix(W, 2 * W)
    up = jnp.einsum("oh,bchw,pw->bcop", UH, fd, UW)                 # bilinear upsample
    avg = jnp.mean(up, axis=1, keepdims=True)
    mx = jnp.max(up, axis=1, keepdims=True)
    wm, bm = params["w_merg"], params["b_merg"]
    weights = jax.nn.sigmoid(wm[0, 0, 0, 0] * avg + wm[0, 1, 0, 0] * mx + bm[0])
    wd = params["w_down"].reshape(C, C2)
    down = jnp.einsum("oc,bchw->bohw", wd, up) + params["b_down"][None, :, None, None]
    return fs * weights + down


if __name__ == "__main__":
    key = jax.random.PRNGKey(0)
    k1, k2, k3, k4, k5, k6 = jax.random.split(key, 6)

    B, dim, H, W = 2, 4, 16, 16        # fd: (B, 2*dim, H, W); s_size = 2*H = 32
    fd = jax.random.normal(k1, (B, 2 * dim, H, W), jnp.float32)
    fs = jax.random.normal(k2, (B, dim, 2 * H, 2 * W), jnp.float32)

    params = {
        "w_merg": jax.random.normal(k3, (1, 2, 1, 1), jnp.float32) * 0.5,
        "b_merg": jax.random.normal(k4, (1,), jnp.float32) * 0.1,
        "w_down": jax.random.normal(k5, (dim, 2 * dim, 1, 1), jnp.float32) * 0.2,
        "b_down": jax.random.normal(k6, (dim,), jnp.float32) * 0.1,
    }

    ref = cfilter_reference(fd, fs, params)

    # f32 MXU operands: strict parity with the pure-JAX reference.
    out = jax.block_until_ready(cfilter_forward(fd, fs, params))
    assert out.shape == fs.shape, (out.shape, fs.shape)
    max_err = float(jnp.max(jnp.abs(out - ref)))
    assert jnp.allclose(out, ref, atol=1e-4, rtol=1e-4), max_err

    # bf16 MXU operands (recommended on v6e/v7x), f32 accumulation: loose check.
    out_bf16 = jax.block_until_ready(
        cfilter_forward(fd, fs, params, mxu_dtype=jnp.bfloat16))
    max_err_bf16 = float(jnp.max(jnp.abs(out_bf16 - ref)))
    assert max_err_bf16 < 0.25, max_err_bf16

    print("KERNEL_OK")
</pallas_src>

<mosaic_0001>
module attributes {stable_mosaic.version = 11 : i64} {
  func.func @_cfilter_kernel_flat(%arg0: i32, %arg1: i32, %arg2: memref<3xf32, #tpu.memory_space<smem>>, %arg3: memref<1x8x16x16xf32, #tpu.memory_space<vmem>>, %arg4: memref<1x4x1024xf32, #tpu.memory_space<vmem>>, %arg5: memref<32x16xf32, #tpu.memory_space<vmem>>, %arg6: memref<16x32xf32, #tpu.memory_space<vmem>>, %arg7: memref<4x8xf32, #tpu.memory_space<vmem>>, %arg8: memref<4x1xf32, #tpu.memory_space<vmem>>, %arg9: memref<1x4x1024xf32, #tpu.memory_space<vmem>>) attributes {dimension_semantics = [#tpu.dimension_semantics<parallel>, #tpu.dimension_semantics<parallel>], iteration_bounds = array<i64: 2, 1>, scalar_prefetch = 0 : i64, scratch_operands = 0 : i64, tpu.core_type = #tpu.core_type<tc>, window_params = [{transform_indices = @transform_0, window_bounds = array<i64: 3>}, {transform_indices = @transform_1, window_bounds = array<i64: 1, 8, 16, 16>}, {transform_indices = @transform_2, window_bounds = array<i64: 1, 4, 1024>}, {transform_indices = @transform_3, window_bounds = array<i64: 32, 16>}, {pipeline_mode = #tpu.pipeline_mode<synchronous>, transform_indices = @transform_4, window_bounds = array<i64: 16, 32>}, {pipeline_mode = #tpu.pipeline_mode<synchronous>, transform_indices = @transform_5, window_bounds = array<i64: 4, 8>}, {pipeline_mode = #tpu.pipeline_mode<synchronous>, transform_indices = @transform_6, window_bounds = array<i64: 4, 1>}, {transform_indices = @transform_7, window_bounds = array<i64: 1, 4, 1024>}]} {
    %c0 = arith.constant 0 : index
    %c0_0 = arith.constant 0 : index
    %c0_1 = arith.constant 0 : index
    %c0_2 = arith.constant 0 : index
    %0 = vector.load %arg3[%c0, %c0_0, %c0_1, %c0_2] : memref<1x8x16x16xf32, #tpu.memory_space<vmem>>, vector<1x8x16x16xf32>
    %1 = vector.shape_cast %0 : vector<1x8x16x16xf32> to vector<8x16x16xf32>
    %c0_3 = arith.constant 0 : index
    %c0_4 = arith.constant 0 : index
    %2 = vector.load %arg5[%c0_3, %c0_4] : memref<32x16xf32, #tpu.memory_space<vmem>>, vector<32x16xf32>
    %c0_5 = arith.constant 0 : index
    %c0_6 = arith.constant 0 : index
    %3 = vector.load %arg6[%c0_5, %c0_6] : memref<16x32xf32, #tpu.memory_space<vmem>>, vector<16x32xf32>
    %4 = vector.shape_cast %2 : vector<32x16xf32> to vector<1x32x16xf32>
    %5 = vector.shape_cast %4 : vector<1x32x16xf32> to vector<1x32x16xf32>
    %6 = vector.broadcast %5 : vector<1x32x16xf32> to vector<8x32x16xf32>
    "tpu.trace_start"() <{level = 10 : i32, message = "koh,khw->kow"}> : () -> ()
    %cst = arith.constant dense<0.000000e+00> : vector<8x32x16xf32>
    %7 = tpu.matmul %6, %1, %cst {dimension_numbers = #tpu.dot_dimension_numbers<[2], [1], [1], [2], [0, 0, 0, 1, 1, 2], [0], [0]>} : vector<8x32x16xf32>, vector<8x16x16xf32>, vector<8x32x16xf32> -> vector<8x32x16xf32>
    "tpu.trace_stop"() : () -> ()
    %8 = vector.shape_cast %7 : vector<8x32x16xf32> to vector<256x16xf32>
    %cst_7 = arith.constant dense<0.000000e+00> : vector<256x32xf32>
    %9 = tpu.matmul %8, %3, %cst_7 {dimension_numbers = #tpu.dot_dimension_numbers<[1], [0], [0], [1], [0, 0, 1, 1], [], []>} : vector<256x16xf32>, vector<16x32xf32>, vector<256x32xf32> -> vector<256x32xf32>
    %10 = vector.shape_cast %9 : vector<256x32xf32> to vector<8x1024xf32>
    %cst_8 = arith.constant dense<0.000000e+00> : vector<1024xf32>
    %11 = vector.multi_reduction <add>, %10, %cst_8 [0] : vector<8x1024xf32> to vector<1024xf32>
    %12 = vector.shape_cast %11 : vector<1024xf32> to vector<1x1024xf32>
    %cst_9 = arith.constant 8.000000e+00 : f32
    %13 = vector.broadcast %cst_9 : f32 to vector<1x1024xf32>
    %14 = arith.divf %12, %13 : vector<1x1024xf32>
    %cst_10 = arith.constant dense<0xFF800000> : vector<1024xf32>
    %15 = vector.multi_reduction <maximumf>, %10, %cst_10 [0] : vector<8x1024xf32> to vector<1024xf32>
    %16 = vector.shape_cast %15 : vector<1024xf32> to vector<1x1024xf32>
    %c0_11 = arith.constant 0 : index
    %17 = memref.load %arg2[%c0_11] : memref<3xf32, #tpu.memory_space<smem>>
    %18 = vector.broadcast %17 : f32 to vector<1x1024xf32>
    %19 = arith.mulf %18, %14 : vector<1x1024xf32>
    %c1 = arith.constant 1 : index
    %20 = memref.load %arg2[%c1] : memref<3xf32, #tpu.memory_space<smem>>
    %21 = vector.broadcast %20 : f32 to vector<1x1024xf32>
    %22 = arith.mulf %21, %16 : vector<1x1024xf32>
    %23 = arith.addf %19, %22 : vector<1x1024xf32>
    %c2 = arith.constant 2 : index
    %24 = memref.load %arg2[%c2] : memref<3xf32, #tpu.memory_space<smem>>
    %25 = vector.broadcast %24 : f32 to vector<1x1024xf32>
    %26 = arith.addf %23, %25 : vector<1x1024xf32>
    %cst_12 = arith.constant 0.000000e+00 : f32
    %27 = vector.broadcast %cst_12 : f32 to vector<1x1024xf32>
    %28 = arith.subf %27, %26 : vector<1x1024xf32>
    %29 = math.exp %28 : vector<1x1024xf32>
    %cst_13 = arith.constant 1.000000e+00 : f32
    %30 = vector.broadcast %cst_13 : f32 to vector<1x1024xf32>
    %31 = arith.addf %30, %29 : vector<1x1024xf32>
    %cst_14 = arith.constant 1.000000e+00 : f32
    %32 = vector.broadcast %cst_14 : f32 to vector<1x1024xf32>
    %33 = arith.divf %32, %31 : vector<1x1024xf32>
    %c0_15 = arith.constant 0 : index
    %c0_16 = arith.constant 0 : index
    %34 = vector.load %arg7[%c0_15, %c0_16] : memref<4x8xf32, #tpu.memory_space<vmem>>, vector<4x8xf32>
    %cst_17 = arith.constant dense<0.000000e+00> : vector<4x1024xf32>
    %35 = tpu.matmul %34, %10, %cst_17 {dimension_numbers = #tpu.dot_dimension_numbers<[1], [0], [0], [1], [0, 0, 1, 1], [], []>} : vector<4x8xf32>, vector<8x1024xf32>, vector<4x1024xf32> -> vector<4x1024xf32>
    %c0_18 = arith.constant 0 : index
    %c0_19 = arith.constant 0 : index
    %36 = vector.load %arg8[%c0_18, %c0_19] : memref<4x1xf32, #tpu.memory_space<vmem>>, vector<4x1xf32>
    %37 = vector.broadcast %36 : vector<4x1xf32> to vector<4x1024xf32>
    %38 = arith.addf %35, %37 : vector<4x1024xf32>
    %c0_20 = arith.constant 0 : index
    %c0_21 = arith.constant 0 : index
    %c0_22 = arith.constant 0 : index
    %39 = vector.load %arg4[%c0_20, %c0_21, %c0_22] : memref<1x4x1024xf32, #tpu.memory_space<vmem>>, vector<1x4x1024xf32>
    %40 = vector.shape_cast %39 : vector<1x4x1024xf32> to vector<4x1024xf32>
    %41 = vector.broadcast %33 : vector<1x1024xf32> to vector<4x1024xf32>
    %42 = arith.mulf %40, %41 : vector<4x1024xf32>
    %43 = arith.addf %42, %38 : vector<4x1024xf32>
    %c0_23 = arith.constant 0 : index
    %c0_24 = arith.constant 0 : index
    %c0_25 = arith.constant 0 : index
    %44 = vector.load %arg9[%c0_23, %c0_24, %c0_25] : memref<1x4x1024xf32, #tpu.memory_space<vmem>>, vector<1x4x1024xf32>
    %45 = vector.shape_cast %44 : vector<1x4x1024xf32> to vector<4x1024xf32>
    %46 = vector.shape_cast %43 : vector<4x1024xf32> to vector<1x4x1024xf32>
    tpu.vector_store %arg9[%c0_23, %c0_24, %c0_25], %46 {strides = array<i32>} : memref<1x4x1024xf32, #tpu.memory_space<vmem>>, vector<1x4x1024xf32>,
    return
  }
  func.func @transform_0(%arg0: i32, %arg1: i32) -> i32 {
    %c0_i32 = arith.constant 0 : i32
    %c0_i32_0 = arith.constant 0 : i32
    return %c0_i32 : i32
  }
  func.func @transform_1(%arg0: i32, %arg1: i32) -> (i32, i32, i32, i32) {
    %c0_i32 = arith.constant 0 : i32
    %c0_i32_0 = arith.constant 0 : i32
    %c0_i32_1 = arith.constant 0 : i32
    %c0_i32_2 = arith.constant 0 : i32
    return %arg0, %c0_i32, %c0_i32_0, %c0_i32_1 : i32, i32, i32, i32
  }
  func.func @transform_2(%arg0: i32, %arg1: i32) -> (i32, i32, i32) {
    %c0_i32 = arith.constant 0 : i32
    %c0_i32_0 = arith.constant 0 : i32
    return %arg0, %c0_i32, %arg1 : i32, i32, i32
  }
  func.func @transform_3(%arg0: i32, %arg1: i32) -> (i32, i32) {
    %c0_i32 = arith.constant 0 : i32
    %c0_i32_0 = arith.constant 0 : i32
    return %arg1, %c0_i32 : i32, i32
  }
  func.func @transform_4(%arg0: i32, %arg1: i32) -> (i32, i32) {
    %c0_i32 = arith.constant 0 : i32
    %c0_i32_0 = arith.constant 0 : i32
    %c0_i32_1 = arith.constant 0 : i32
    return %c0_i32, %c0_i32_0 : i32, i32
  }
  func.func @transform_5(%arg0: i32, %arg1: i32) -> (i32, i32) {
    %c0_i32 = arith.constant 0 : i32
    %c0_i32_0 = arith.constant 0 : i32
    %c0_i32_1 = arith.constant 0 : i32
    return %c0_i32, %c0_i32_0 : i32, i32
  }
  func.func @transform_6(%arg0: i32, %arg1: i32) -> (i32, i32) {
    %c0_i32 = arith.constant 0 : i32
    %c0_i32_0 = arith.constant 0 : i32
    %c0_i32_1 = arith.constant 0 : i32
    return %c0_i32, %c0_i32_0 : i32, i32
  }
  func.func @transform_7(%arg0: i32, %arg1: i32) -> (i32, i32, i32) {
    %c0_i32 = arith.constant 0 : i32
    %c0_i32_0 = arith.constant 0 : i32
    return %arg0, %c0_i32, %arg1 : i32, i32, i32
  }
}

module attributes {stable_mosaic.version = 11 : i64} {
  func.func @_cfilter_kernel_safe(%arg0: i32, %arg1: i32, %arg2: memref<3xf32, #tpu.memory_space<smem>>, %arg3: memref<1x8x16x16xf32, #tpu.memory_space<vmem>>, %arg4: memref<1x4x32x32xf32, #tpu.memory_space<vmem>>, %arg5: memref<32x16xf32, #tpu.memory_space<vmem>>, %arg6: memref<16x32xf32, #tpu.memory_space<vmem>>, %arg7: memref<4x8xf32, #tpu.memory_space<vmem>>, %arg8: memref<4x1xf32, #tpu.memory_space<vmem>>, %arg9: memref<1x4x32x32xf32, #tpu.memory_space<vmem>>) attributes {dimension_semantics = [#tpu.dimension_semantics<parallel>, #tpu.dimension_semantics<parallel>], iteration_bounds = array<i64: 2, 1>, scalar_prefetch = 0 : i64, scratch_operands = 0 : i64, tpu.core_type = #tpu.core_type<tc>, window_params = [{transform_indices = @transform_0, window_bounds = array<i64: 3>}, {transform_indices = @transform_1, window_bounds = array<i64: 1, 8, 16, 16>}, {transform_indices = @transform_2, window_bounds = array<i64: 1, 4, 32, 32>}, {transform_indices = @transform_3, window_bounds = array<i64: 32, 16>}, {pipeline_mode = #tpu.pipeline_mode<synchronous>, transform_indices = @transform_4, window_bounds = array<i64: 16, 32>}, {pipeline_mode = #tpu.pipeline_mode<synchronous>, transform_indices = @transform_5, window_bounds = array<i64: 4, 8>}, {pipeline_mode = #tpu.pipeline_mode<synchronous>, transform_indices = @transform_6, window_bounds = array<i64: 4, 1>}, {transform_indices = @transform_7, window_bounds = array<i64: 1, 4, 32, 32>}]} {
    %c0 = arith.constant 0 : index
    %c0_0 = arith.constant 0 : index
    %c0_1 = arith.constant 0 : index
    %c0_2 = arith.constant 0 : index
    %0 = vector.load %arg3[%c0, %c0_0, %c0_1, %c0_2] : memref<1x8x16x16xf32, #tpu.memory_space<vmem>>, vector<1x8x16x16xf32>
    %1 = vector.shape_cast %0 : vector<1x8x16x16xf32> to vector<8x16x16xf32>
    %c0_3 = arith.constant 0 : index
    %c0_4 = arith.constant 0 : index
    %2 = vector.load %arg5[%c0_3, %c0_4] : memref<32x16xf32, #tpu.memory_space<vmem>>, vector<32x16xf32>
    %c0_5 = arith.constant 0 : index
    %c0_6 = arith.constant 0 : index
    %3 = vector.load %arg6[%c0_5, %c0_6] : memref<16x32xf32, #tpu.memory_space<vmem>>, vector<16x32xf32>
    %4 = vector.shape_cast %2 : vector<32x16xf32> to vector<1x32x16xf32>
    %5 = vector.shape_cast %4 : vector<1x32x16xf32> to vector<1x32x16xf32>
    %6 = vector.broadcast %5 : vector<1x32x16xf32> to vector<8x32x16xf32>
    "tpu.trace_start"() <{level = 10 : i32, message = "koh,khw->kow"}> : () -> ()
    %cst = arith.constant dense<0.000000e+00> : vector<8x32x16xf32>
    %7 = tpu.matmul %6, %1, %cst {dimension_numbers = #tpu.dot_dimension_numbers<[2], [1], [1], [2], [0, 0, 0, 1, 1, 2], [0], [0]>} : vector<8x32x16xf32>, vector<8x16x16xf32>, vector<8x32x16xf32> -> vector<8x32x16xf32>
    "tpu.trace_stop"() : () -> ()
    %8 = vector.shape_cast %7 : vector<8x32x16xf32> to vector<256x16xf32>
    %cst_7 = arith.constant dense<0.000000e+00> : vector<256x32xf32>
    %9 = tpu.matmul %8, %3, %cst_7 {dimension_numbers = #tpu.dot_dimension_numbers<[1], [0], [0], [1], [0, 0, 1, 1], [], []>} : vector<256x16xf32>, vector<16x32xf32>, vector<256x32xf32> -> vector<256x32xf32>
    %10 = vector.shape_cast %9 : vector<256x32xf32> to vector<8x32x32xf32>
    %cst_8 = arith.constant dense<0.000000e+00> : vector<32x32xf32>
    %11 = vector.multi_reduction <add>, %10, %cst_8 [0] : vector<8x32x32xf32> to vector<32x32xf32>
    %cst_9 = arith.constant 8.000000e+00 : f32
    %12 = vector.broadcast %cst_9 : f32 to vector<32x32xf32>
    %13 = arith.divf %11, %12 : vector<32x32xf32>
    %cst_10 = arith.constant dense<0xFF800000> : vector<32x32xf32>
    %14 = vector.multi_reduction <maximumf>, %10, %cst_10 [0] : vector<8x32x32xf32> to vector<32x32xf32>
    %c0_11 = arith.constant 0 : index
    %15 = memref.load %arg2[%c0_11] : memref<3xf32, #tpu.memory_space<smem>>
    %16 = vector.broadcast %15 : f32 to vector<32x32xf32>
    %17 = arith.mulf %16, %13 : vector<32x32xf32>
    %c1 = arith.constant 1 : index
    %18 = memref.load %arg2[%c1] : memref<3xf32, #tpu.memory_space<smem>>
    %19 = vector.broadcast %18 : f32 to vector<32x32xf32>
    %20 = arith.mulf %19, %14 : vector<32x32xf32>
    %21 = arith.addf %17, %20 : vector<32x32xf32>
    %c2 = arith.constant 2 : index
    %22 = memref.load %arg2[%c2] : memref<3xf32, #tpu.memory_space<smem>>
    %23 = vector.broadcast %22 : f32 to vector<32x32xf32>
    %24 = arith.addf %21, %23 : vector<32x32xf32>
    %cst_12 = arith.constant 0.000000e+00 : f32
    %25 = vector.broadcast %cst_12 : f32 to vector<32x32xf32>
    %26 = arith.subf %25, %24 : vector<32x32xf32>
    %27 = math.exp %26 : vector<32x32xf32>
    %cst_13 = arith.constant 1.000000e+00 : f32
    %28 = vector.broadcast %cst_13 : f32 to vector<32x32xf32>
    %29 = arith.addf %28, %27 : vector<32x32xf32>
    %cst_14 = arith.constant 1.000000e+00 : f32
    %30 = vector.broadcast %cst_14 : f32 to vector<32x32xf32>
    %31 = arith.divf %30, %29 : vector<32x32xf32>
    %c0_15 = arith.constant 0 : index
    %c0_16 = arith.constant 0 : index
    %32 = vector.load %arg7[%c0_15, %c0_16] : memref<4x8xf32, #tpu.memory_space<vmem>>, vector<4x8xf32>
    %33 = vector.shape_cast %32 : vector<4x8xf32> to vector<4x8x1x1xf32>
    %34 = vector.shape_cast %10 : vector<8x32x32xf32> to vector<1x8x32x32xf32>
    %35 = vector.broadcast %33 : vector<4x8x1x1xf32> to vector<4x8x32x32xf32>
    %36 = vector.broadcast %34 : vector<1x8x32x32xf32> to vector<4x8x32x32xf32>
    %37 = arith.mulf %35, %36 : vector<4x8x32x32xf32>
    %cst_17 = arith.constant dense<0.000000e+00> : vector<4x32x32xf32>
    %38 = vector.multi_reduction <add>, %37, %cst_17 [1] : vector<4x8x32x32xf32> to vector<4x32x32xf32>
    %c0_18 = arith.constant 0 : index
    %c0_19 = arith.constant 0 : index
    %39 = vector.load %arg8[%c0_18, %c0_19] : memref<4x1xf32, #tpu.memory_space<vmem>>, vector<4x1xf32>
    %40 = vector.shape_cast %39 : vector<4x1xf32> to vector<4x1x1xf32>
    %41 = vector.broadcast %40 : vector<4x1x1xf32> to vector<4x32x32xf32>
    %42 = arith.addf %38, %41 : vector<4x32x32xf32>
    %c0_20 = arith.constant 0 : index
    %c0_21 = arith.constant 0 : index
    %c0_22 = arith.constant 0 : index
    %c0_23 = arith.constant 0 : index
    %43 = vector.load %arg4[%c0_20, %c0_21, %c0_22, %c0_23] : memref<1x4x32x32xf32, #tpu.memory_space<vmem>>, vector<1x4x32x32xf32>
    %44 = vector.shape_cast %43 : vector<1x4x32x32xf32> to vector<4x32x32xf32>
    %45 = vector.shape_cast %31 : vector<32x32xf32> to vector<1x32x32xf32>
    %46 = vector.broadcast %45 : vector<1x32x32xf32> to vector<4x32x32xf32>
    %47 = arith.mulf %44, %46 : vector<4x32x32xf32>
    %48 = arith.addf %47, %42 : vector<4x32x32xf32>
    %c0_24 = arith.constant 0 : index
    %c0_25 = arith.constant 0 : index
    %c0_26 = arith.constant 0 : index
    %c0_27 = arith.constant 0 : index
    %49 = vector.load %arg9[%c0_24, %c0_25, %c0_26, %c0_27] : memref<1x4x32x32xf32, #tpu.memory_space<vmem>>, vector<1x4x32x32xf32>
    %50 = vector.shape_cast %49 : vector<1x4x32x32xf32> to vector<4x32x32xf32>
    %51 = vector.shape_cast %48 : vector<4x32x32xf32> to vector<1x4x32x32xf32>
    tpu.vector_store %arg9[%c0_24, %c0_25, %c0_26, %c0_27], %51 {strides = array<i32>} : memref<1x4x32x32xf32, #tpu.memory_space<vmem>>, vector<1x4x32x32xf32>,
    return
  }
  func.func @transform_0(%arg0: i32, %arg1: i32) -> i32 {
    %c0_i32 = arith.constant 0 : i32
    %c0_i32_0 = arith.constant 0 : i32
    return %c0_i32 : i32
  }
  func.func @transform_1(%arg0: i32, %arg1: i32) -> (i32, i32, i32, i32) {
    %c0_i32 = arith.constant 0 : i32
    %c0_i32_0 = arith.constant 0 : i32
    %c0_i32_1 = arith.constant 0 : i32
    %c0_i32_2 = arith.constant 0 : i32
    return %arg0, %c0_i32, %c0_i32_0, %c0_i32_1 : i32, i32, i32, i32
  }
  func.func @transform_2(%arg0: i32, %arg1: i32) -> (i32, i32, i32, i32) {
    %c0_i32 = arith.constant 0 : i32
    %c0_i32_0 = arith.constant 0 : i32
    %c0_i32_1 = arith.constant 0 : i32
    return %arg0, %c0_i32, %arg1, %c0_i32_0 : i32, i32, i32, i32
  }
  func.func @transform_3(%arg0: i32, %arg1: i32) -> (i32, i32) {
    %c0_i32 = arith.constant 0 : i32
    %c0_i32_0 = arith.constant 0 : i32
    return %arg1, %c0_i32 : i32, i32
  }
  func.func @transform_4(%arg0: i32, %arg1: i32) -> (i32, i32) {
    %c0_i32 = arith.constant 0 : i32
    %c0_i32_0 = arith.constant 0 : i32
    %c0_i32_1 = arith.constant 0 : i32
    return %c0_i32, %c0_i32_0 : i32, i32
  }
  func.func @transform_5(%arg0: i32, %arg1: i32) -> (i32, i32) {
    %c0_i32 = arith.constant 0 : i32
    %c0_i32_0 = arith.constant 0 : i32
    %c0_i32_1 = arith.constant 0 : i32
    return %c0_i32, %c0_i32_0 : i32, i32
  }
  func.func @transform_6(%arg0: i32, %arg1: i32) -> (i32, i32) {
    %c0_i32 = arith.constant 0 : i32
    %c0_i32_0 = arith.constant 0 : i32
    %c0_i32_1 = arith.constant 0 : i32
    return %c0_i32, %c0_i32_0 : i32, i32
  }
  func.func @transform_7(%arg0: i32, %arg1: i32) -> (i32, i32, i32, i32) {
    %c0_i32 = arith.constant 0 : i32
    %c0_i32_0 = arith.constant 0 : i32
    %c0_i32_1 = arith.constant 0 : i32
    return %arg0, %c0_i32, %arg1, %c0_i32_0 : i32, i32, i32, i32
  }
}

</mosaic_0001>

<bundles_post_ra>
// kernel: tpu_custom_call.1
= control target key start
LH: loop header
LB: loop body
LE: loop exit
PB: predicated region body
PF: predicated region fallthrough
CT: control target
= control target key end

     0   :  { %s3630_s0 = inlined_call_operand.vmem [shape: f32[3], index: 0, kind: input, shape index: {}]   ;;  %s3631_s1 = inlined_call_operand.hbm [shape: f32[2,8,16,16], index: 1, kind: input, shape index: {}]   ;;  %s3632_s2 = inlined_call_operand.hbm [shape: f32[2,4,32,32], index: 2, kind: input, shape index: {}]   ;;  %s3633_s3 = inlined_call_operand.vmem [shape: f32[32,16], index: 3, kind: input, shape index: {}]   ;;  %s3634_s4 = inlined_call_operand.vmem [shape: f32[16,32], index: 4, kind: input, shape index: {}]   ;;  %s3635_s5 = inlined_call_operand.vmem [shape: f32[4,8], index: 5, kind: input, shape index: {}]   ;;  %s3636_s6 = inlined_call_operand.vmem [shape: f32[4,1], index: 6, kind: input, shape index: {}]   ;;  %s3637_s7 = inlined_call_operand.hbm [shape: f32[2,4,32,32], index: 7, kind: output, shape index: {}]  }
   0x1   :  { %3669 = sst [smem:[#allocation51_spill]] %s3630_s0 }
   0x2   :  { %3670 = sst [smem:[#allocation52_spill]] %s3631_s1 }
   0x3   :  { %12 = vsyncpa [#allocation5], 0 }
   0x4   :  { %13 = vsyncpa [#allocation3], 0 }
   0x5   :  { %15 = vsyncpa [#allocation3 + $0x1], 0 }
   0x6   :  { %16 = vsyncpa [#allocation8], 0 }
   0x7   :  { %18 = vsyncpa [#allocation8 + $0x1], 0 }
   0x8   :  { %19 = vsyncpa [#allocation4], 0 }
   0x9   :  { %21 = vsyncpa [#allocation4 + $0x1], 0  ;;  %s2210_s24 = smov 0   ;;  %s2212_s25 = smov 0  }
   0xa   :  { %s2214_s26 = smov 0   ;;  %s2216_s27 = smov 0  }
   0xb   :  { %s2218_s28 = smov 0   ;;  %s2220_s29 = smov 0  }
   0xc LB: > { %3671 = sst [smem:[#allocation14_spill]] %s2141_s24  ;;  %s1792_s30 = sadd.s32 4294967295, %s2161_s29   ;;  %s2161_s29 = sphi %s2220_s29, %s27_s29   ;;  %s2157_s28 = sphi %s2218_s28, %s3806_s28   ;;  %s2153_s27 = sphi %s2216_s27, %s3805_s27   ;;  %s2149_s26 = sphi %s2214_s26, %s3809_s26   ;;  %s2145_s25 = sphi %s2212_s25, %s3808_s25   ;;  %s2141_s24 = sphi %s2210_s24, %s3807_s24  }
   0xd   : > { %3672 = sst [smem:[#allocation15_spill]] %s2157_s28  ;;  %s1793_s8 = sadd.s32 4294967294, %s2161_s29  }
   0xe   : > { %3673 = sst [smem:[#allocation16_spill]] %s2161_s29  ;;  %p74_p0 = scmp.ne.s32.totalorder %s2149_s26, %s2145_s25 }
   0xf   : > { %p75_p1 = scmp.eq.s32.totalorder %s2161_s29, 0  ;;  %p80_p2 = scmp.ne.s32.totalorder %s2145_s25, %s2141_s24 }
  0x10   : > { %p2248_p3 = scmp.eq.s32.totalorder %s1792_s30, 0  ;;  %p223_p4 = scmp.eq.s32.totalorder %s1792_s30, 1 }
  0x11   : > { %p2252_p5 = por %p75_p1, %p74_p0  ;;  %p229_p6 = scmp.eq.s32.totalorder %s1793_s8, 1 }
  0x12   : > { %p2258_p7 = por %p2248_p3, %p80_p2  ;;  %p2262_p8 = por %p223_p4, %p74_p0 }
  0x13   : > { %p2266_p9 = por %p229_p6, %p80_p2  ;;  %p1794_p10 = scmp.ge.s32.totalorder %s2161_s29, 1 }
  0x14   : > { %s3677_s13 = scalar_select %p2262_p8, 1, 0 }
  0x15   : > { %s3679_s14 = scalar_select %p2266_p9, 1, 0 }
  0x16   : > { %3678 = sst [smem:[#allocation17_spill]] %s3677_s13  ;;  %p236_p11 = scmp.lt.s32.totalorder %s2161_s29, 3 }
  0x17   : > { %3680 = sst [smem:[#allocation18_spill]] %s3679_s14  ;;  %p1797_p13 = scmp.ge.s32.totalorder %s2161_s29, 2 }
  0x18   : > { %s3681_s0 = sld [smem:[#allocation51_spill]]  ;;  %p2275_p12 = pnand %p1794_p10, %p236_p11 }
  0x19   : > { %p1915_p0 = scmp.lt.s32.totalorder %s2161_s29, 2  ;;  %s39_s20 = sadd.s32 1, %s2157_s28 }
  0x1a   : > { %p1899_p1 = pneg %p2275_p12  ;;  %p41_p6 = scmp.ge.s32.totalorder %s39_s20, 2 }
  0x1b   : > { %p2285_p2 = pnand %p1915_p0, %p2252_p5  ;;  %s2293_s21 = sand.u32 1, %s2149_s26  }
  0x1c   : > { %p1900_p4 = pnand %p1899_p1, %p2248_p3  ;;  %s2163_s22 = smov [#allocation2]  }
  0x1d   : > { %s3811_s20 = smov (%p41_p6, %s39_s20), 0  ;;  %s1798_s23 = sshll.u32 %s2293_s21, 7 }
  0x1e   : > { %s248_s17 = sshll.u32 %s3681_s0, 4  ;;  %3684 = sst [smem:[#allocation19_spill]] %s3811_s20  ;;  %s249_s17 = int_to_ptr.vmem [resolvable:$true] %s248_s17 }
  0x1f   : > { %1902 = dma.vmem_to_smem (!%p1900_p4), %s249_s17, 16, %s2163_s22, [#allocation5]  }
  0x20   : > { %s64_s30 = ssub.s32 %s2157_s28, %s3811_s20  ;;  %s1880_s8 = sshll.u32 %s2157_s28, 7 }
  0x21   : > { %p65_p5 = scmp.eq.s32.totalorder %s64_s30, 0  ;;  %s3685_s1 = sld [smem:[#allocation52_spill]] }
  0x22   : > { %s281_s9 = scalar_lea.vmem [#allocation6], %s1798_s23  ;;  %s3686_s29 = sadd.s32 1, %s2149_s26 }
  0x23   : > { %s289_s0 = sshll.u32 %s281_s9, 4  ;;  %s278_s22 = scalar_lea.sflag [#allocation3], %s2293_s21  ;;  %s290_s0 = int_to_ptr.vmem [resolvable:$true] %s289_s0 }
  0x24   : > { %s2307_s14 = scalar_select %p65_p5, %s2149_s26, %s3686_s29  }
  0x25   : > { %s2164_s24 = smov 128   ;;  %s2165_s13 = smov 8  }
  0x26   : > { %s310_s11 = scalar_lea.hbm %s3632_s2, %s1880_s8  ;;  %s300_s9 = scalar_lea.sflag [#allocation8], %s2293_s21 }
  0x27   : > { %s286_s16 = scalar_lea.hbm %s3685_s1, %s1880_s8  ;;  %s311_s15 = sshll.u32 %s310_s11, 4  ;;  %s312_s15 = int_to_ptr.hbm [resolvable:$true] %s311_s15 }
  0x28   : > { %s287_s17 = sshll.u32 %s286_s16, 4  ;;  %s303_s1 = scalar_lea.vmem [#allocation7], %s1798_s23  ;;  %s288_s17 = int_to_ptr.hbm [resolvable:$true] %s287_s17 }
  0x29   : > { %1906 = dma.hbm_to_vmem [thread:$0]  (!%p2285_p2), %s288_s17, 2048, %s290_s0, %s278_s22, %s2164_s24, %s2164_s24, %s2165_s13  }
  0x2a   : > { %s313_s28 = sshll.u32 %s303_s1, 4  ;;  %325 = sbr.rel (%p2275_p12) target bundleno = 515 (0x203), region = 48  ;;  %s314_s28 = int_to_ptr.vmem [resolvable:$true] %s313_s28 }
  0x2b   : > { %1909 = dma.hbm_to_vmem [thread:$0]  (!%p2285_p2), %s312_s15, 2048, %s314_s28, %s300_s9, %s2164_s24, %s2164_s24, %s2165_s13  }
  0x2f   : > { %2124 = dma.done.wait (%p2248_p3), [#allocation5], 16  }
  0x30   : > { %2126 = vsyncadd (%p2248_p3), [#allocation5], 4294967280  ;;  %s2325_s0 = sand.u32 1, %s2145_s25  }
  0x31   : > { %s2328_s1 = sshll.u32 %s2325_s0, 7  ;;  %s333_s29 = scalar_lea.sflag [#allocation3], %s2325_s0 }
  0x32   : > { %s2332_s24 = scalar_lea.vmem [#allocation6], %s2328_s1 }
  0x33   : > { %2128 = dma.done.wait (%p2258_p7), %s333_s29, 2048  }
  0x34   : > { %2130 = vsyncadd (%p2258_p7), %s333_s29, 4294965248  ;;  %s343_s28 = scalar_lea.sflag [#allocation8], %s2325_s0  ;;  %s2340_s10 = scalar_lea.vmem [#allocation7], %s2328_s1 }
  0x35   : > { %2132 = dma.done.wait (%p2258_p7), %s343_s28, 2048  }
  0x36   : > { %2134 = vsyncadd (%p2258_p7), %s343_s28, 4294965248 }
  0x37   : > { %352 = sfence }
  0x38   : > { %v398_v0 = vld [vmem:[%s2332_s24 + $0x8] sm:$0xff]  ;;  %v397_v2 = vld [vmem:[%s2332_s24] sm:$0xff]  ;;  %vm419_vm0 = vcmask 130048   ;;  %v400_v9 = vld [vmem:[%s2332_s24 + $0x18] sm:$0xff]  ;;  %v1105_v20 = vlaneseq  ;;  %v2166_v56 = vmov 0   ;;  %vm873_vm1 = vcmask 261120  }
  0x39   : > { %v402_v1 = vld [vmem:[%s2332_s24 + $0x28] sm:$0xff]  ;;  %446 = vmatpush.msra.mxu0 %v398_v0  ;;  %v401_v3 = vld [vmem:[%s2332_s24 + $0x20] sm:$0xff]  ;;  %v404_v10 = vld [vmem:[%s2332_s24 + $0x38] sm:$0xff]  ;;  %475 = vmatpush.msra.mxu1 %v400_v9  ;;  %s3115_s28 = sld [smem:[#allocation2]]  ;;  %s3462_s13 = scalar_lea.vmem [#allocation9], %s2328_s1 }
  0x3a   : > { %504 = vmatpush.msra.mxu2 %v402_v1  ;;  %v413_v4 = vld [vmem:[%s3633_s3] sm:$0xff]  ;;  %v410_v5 = vld [vmem:[%s2332_s24 + $0x68] sm:$0xff]  ;;  %v399_v11 = vld [vmem:[%s2332_s24 + $0x10] sm:$0xff]  ;;  %533 = vmatpush.msra.mxu3 %v404_v10  ;;  %v1106_v22 = vshrl.u32 %v1105_v20, 7  ;;  %s3184_s12 = sld [smem:[#allocation2 + $0x2]]  ;;  %s1882_s1 = sshll.u32 %s2153_s27, 7 }
  0x3b   : > { %v406_v6 = vld [vmem:[%s2332_s24 + $0x48] sm:$0xff]  ;;  %447 = vmatpush.msra.mxu0 %v397_v2  ;;  %v409_v7 = vld [vmem:[%s2332_s24 + $0x60] sm:$0xff]  ;;  %v403_v12 = vld [vmem:[%s2332_s24 + $0x30] sm:$0xff]  ;;  %476 = vmatpush.msra.mxu1 %v399_v11  ;;  %s1651_s20 = scalar_lea.hbm %s3637_s7, %s1882_s1  ;;  %s1652_s27 = sshll.u32 %s3462_s13, 4  ;;  %s1653_s27 = int_to_ptr.vmem [resolvable:$true] %s1652_s27 }
  0x3c   : > { %505 = vmatpush.msra.mxu2 %v401_v3  ;;  %1809 = vmatmul.msk.f32.vlgmr.msra.gmra.mxu0 %vm419_vm0, %v413_v4  ;;  %v405_v8 = vld [vmem:[%s2332_s24 + $0x40] sm:$0xff]  ;;  %v412_v13 = vld [vmem:[%s2332_s24 + $0x78] sm:$0xff]  ;;  %v414_v15 = vld [vmem:[%s3633_s3 + $0x8] sm:$0xff]  ;;  %s1638_s23 = scalar_lea.sflag [#allocation4], %s2325_s0  ;;  %s2091_s30 = scalar_lea.hbm %s3637_s7, 256 }
  0x3d   : > { %1817 = vmatmul.msk.f32.vlgmr.msra.gmra.mxu2 %vm419_vm0, %v413_v4  ;;  %562 = vmatpush.msrb.mxu0 %v406_v6  ;;  %v408_v14 = vld [vmem:[%s2332_s24 + $0x58] sm:$0xff]  ;;  %v415_v16 = vld [vmem:[%s3633_s3 + $0x10] sm:$0xff]  ;;  %v418_v21 = vld [vmem:[%s3634_s4 + $0x8] sm:$0xff] }
  0x3e   : > { %620 = vmatpush.msrb.mxu2 %v410_v5  ;;  %534 = vmatpush.msra.mxu3 %v403_v12  ;;  %v411_v17 = vld [vmem:[%s2332_s24 + $0x70] sm:$0xff]  ;;  %v416_v19 = vld [vmem:[%s3633_s3 + $0x18] sm:$0xff]  ;;  %v417_v23 = vld [vmem:[%s3634_s4] sm:$0xff] }
  0x3f   : > { %563 = vmatpush.msrb.mxu0 %v405_v8  ;;  %1813 = vmatmul.msk.f32.vlgmr.msra.gmra.mxu1 %vm419_vm0, %v413_v4  ;;  %v407_v18 = vld [vmem:[%s2332_s24 + $0x50] sm:$0xff]  ;;  %v1103_v24 = vld [vmem:[%s3635_s5] sm:$0xf]  ;;  %s3103_s24 = sld [smem:[#allocation2 + $0x1]] }
  0x40   : > { %621 = vmatpush.msrb.mxu2 %v409_v7  ;;  %1821 = vmatmul.msk.f32.vlgmr.msra.gmra.mxu3 %vm419_vm0, %v413_v4  ;;  %v1118_v25 = vperm.slane %v1103_v24, 2  ;;  %v1104_v26 = vperm.slane %v1103_v24, 0  ;;  %v1125_v27 = vperm.slane %v1103_v24, 3  ;;  %v1111_v28 = vperm.slane %v1103_v24, 1  ;;  %v1532_v53 = vld [vmem:[%s3636_s6] sm:$0xf] }
  0x41   : > { %649 = vmatpush.msrb.mxu3 %v412_v13  ;;  %591 = vmatpush.msrb.mxu1 %v408_v14  ;;  %v1536_v54 = vrot.slane %v1532_v53, 3  ;;  %v1535_v55 = vrot.slane %v1532_v53, 2  ;;  %v1537_v61 = vperm.slane %v1532_v53, 0  ;;  %v1534_v62 = vrot.slane %v1532_v53, 1 }
  0x42   : > { %774 = vmatpush.msra.mxu0 %v418_v21  ;;  %1884 = vmatpush.msra.mxu2 %v418_v21 }
  0x43   : > { %650 = vmatpush.msrb.mxu3 %v411_v17  ;;  %592 = vmatpush.msrb.mxu1 %v407_v18  ;;  %v1540_v57 = vperm.slane %v1536_v54, 0  ;;  %v1539_v58 = vperm.slane %v1535_v55, 0  ;;  %v1538_v0 = vperm.slane %v1534_v62, 0 }
  0x44   : > { %1810 = vmatmul.msk.f32.gmra.mxu0 %vm419_vm0, %v414_v15  ;;  %1974 = vset.pattern.permute.xlu1 %v1106_v22 }
  0x45   : > { %1818 = vmatmul.msk.f32.gmra.mxu2 %vm419_vm0, %v414_v15  ;;  %1883 = vmatpush.msra.mxu1 %v418_v21 }
  0x46   : > { %1885 = vmatpush.msra.mxu3 %v418_v21  ;;  %1973 = vset.pattern.permute.xlu0 %v1106_v22 }
  0x47   : > { %1814 = vmatmul.msk.f32.gmra.mxu1 %vm419_vm0, %v414_v15  ;;  %775 = vmatpush.msra.mxu0 %v417_v23 }
  0x48   : > { %1822 = vmatmul.msk.f32.gmra.mxu3 %vm419_vm0, %v414_v15  ;;  %1886 = vmatpush.msra.mxu1 %v417_v23 }
  0x49   : > { %1887 = vmatpush.msra.mxu2 %v417_v23  ;;  %1888 = vmatpush.msra.mxu3 %v417_v23 }
  0x4a   : > { %1975 = vset.pattern.permute.xlu2 %v2166_v56 }
  0x4b   : > { %1542 = vperm.xlu2 %1975, %v1537_v61  }
  0x4c   : > { %1811 = vmatmul.msk.f32.gmra.mxu0 %vm419_vm0, %v415_v16  ;;  %1123 = vperm.xlu1 %1974, %v1118_v25  }
  0x4d   : > { %1819 = vmatmul.msk.f32.gmra.mxu2 %vm419_vm0, %v415_v16 }
  0x4e   : > { %1109 = vperm.xlu0 %1973, %v1104_v26  }
  0x4f   : > { %1815 = vmatmul.msk.f32.gmra.mxu1 %vm419_vm0, %v415_v16 }
  0x50   : > { %1823 = vmatmul.msk.f32.gmra.mxu3 %vm419_vm0, %v415_v16 }
  0x53   : > { %1546 = vperm.xlu2 %1975, %v1538_v0  }
  0x54   : > { %1812 = vmatmul.msk.f32.gmra.mxu0 %vm419_vm0, %v416_v19  ;;  %1130 = vperm.xlu1 %1974, %v1125_v27  }
  0x55   : > { %1820 = vmatmul.msk.f32.gmra.mxu2 %vm419_vm0, %v416_v19 }
  0x56   : > { %1116 = vperm.xlu0 %1973, %v1111_v28  }
  0x57   : > { %1816 = vmatmul.msk.f32.gmra.mxu1 %vm419_vm0, %v416_v19 }
  0x58   : > { %1824 = vmatmul.msk.f32.gmra.mxu3 %vm419_vm0, %v416_v19 }
  0x5c   : > { %1825 = vmatmul.msk.f32.vlgmr.msrb.gmra.mxu0 %vm419_vm0, %v413_v4  ;;  %1977 = vset.pattern.permute.xlu1 %v2166_v56 }
  0x5d   : > { %1833 = vmatmul.msk.f32.vlgmr.msrb.gmra.mxu2 %vm419_vm0, %v413_v4  ;;  %1554 = vperm.xlu1 %1977, %v1540_v57  }
  0x5e   : > { %1976 = vset.pattern.permute.xlu0 %v2166_v56 }
  0x5f   : > { %1829 = vmatmul.msk.f32.vlgmr.msrb.gmra.mxu1 %vm419_vm0, %v413_v4  ;;  %1550 = vperm.xlu0 %1976, %v1539_v58  }
  0x60   : > { %1837 = vmatmul.msk.f32.vlgmr.msrb.gmra.mxu3 %vm419_vm0, %v413_v4 }
  0x64   : > { %1826 = vmatmul.msk.f32.gmra.mxu0 %vm419_vm0, %v414_v15 }
  0x65   : > { %1834 = vmatmul.msk.f32.gmra.mxu2 %vm419_vm0, %v414_v15 }
  0x67   : > { %1830 = vmatmul.msk.f32.gmra.mxu1 %vm419_vm0, %v414_v15 }
  0x68   : > { %1838 = vmatmul.msk.f32.gmra.mxu3 %vm419_vm0, %v414_v15 }
  0x6c   : > { %1827 = vmatmul.msk.f32.gmra.mxu0 %vm419_vm0, %v415_v16 }
  0x6d   : > { %1835 = vmatmul.msk.f32.gmra.mxu2 %vm419_vm0, %v415_v16 }
  0x6f   : > { %1831 = vmatmul.msk.f32.gmra.mxu1 %vm419_vm0, %v415_v16 }
  0x70   : > { %1839 = vmatmul.msk.f32.gmra.mxu3 %vm419_vm0, %v415_v16 }
  0x74   : > { %1828 = vmatmul.msk.f32.gmra.mxu0 %vm419_vm0, %v416_v19 }
  0x75   : > { %1836 = vmatmul.msk.f32.gmra.mxu2 %vm419_vm0, %v416_v19 }
  0x77   : > { %1832 = vmatmul.msk.f32.gmra.mxu1 %vm419_vm0, %v416_v19 }
  0x78   : > { %1840 = vmatmul.msk.f32.gmra.mxu3 %vm419_vm0, %v416_v19 }
  0xb9   : > { %v449_v29 = vpop.f32.mrf.mxu0 }
  0xba   : > { %1841 = vmatmul.msk.f32.vlgmr.msra.gmra.mxu0 %vm419_vm0, %v449_v29 }
  0xbc   : > { %v478_v34 = vpop.f32.mrf.mxu1 }
  0xbe   : > { %v2452_v8 = vpop.permute.xlu1 %1123 }
  0xbf   : > { %3688 = vst [vmem:[#allocation21_spill] sm:$0xff] %v2452_v8  ;;  %v2469_v17 = vperm.slane %v2452_v8, 0  ;;  %v2483_v23 = vperm.slane %v2452_v8, 2 }
  0xc0   : > { %v507_v30 = vpop.f32.mrf.mxu2  ;;  %v2450_v7 = vpop.permute.xlu0 %1109 }
  0xc1   : > { %1849 = vmatmul.msk.f32.vlgmr.msra.gmra.mxu1 %vm419_vm0, %v507_v30  ;;  %v452_v31 = vpop.f32.mrf.mxu0  ;;  %3687 = vst [vmem:[#allocation20_spill] sm:$0xff] %v2450_v7  ;;  %v2461_v14 = vperm.slane %v2450_v7, 0  ;;  %v2475_v19 = vperm.slane %v2450_v7, 2  ;;  %v2493_v28 = vperm.slane %v2450_v7, 1  ;;  %v2499_v30 = vperm.slane %v2452_v8, 1 }
  0xc2   : > { %1842 = vmatmul.msk.f32.gmra.mxu0 %vm419_vm0, %v452_v31  ;;  %v2577_v0 = vperm.slane %v2450_v7, 4 }
  0xc3   : > { %v536_v36 = vpop.f32.mrf.mxu3 }
  0xc4   : > { %v481_v38 = vpop.f32.mrf.mxu1 }
  0xc6   : > { %v2456_v12 = vpop.permute.xlu1 %1130 }
  0xc7   : > { %3690 = vst [vmem:[#allocation23_spill] sm:$0xff] %v2456_v12  ;;  %v2472_v18 = vperm.slane %v2456_v12, 0  ;;  %v2486_v24 = vperm.slane %v2456_v12, 2  ;;  %v2502_v31 = vperm.slane %v2456_v12, 1 }
  0xc8   : > { %v510_v32 = vpop.f32.mrf.mxu2  ;;  %v2454_v11 = vpop.permute.xlu0 %1116 }
  0xc9   : > { %1850 = vmatmul.msk.f32.gmra.mxu1 %vm419_vm0, %v510_v32  ;;  %v455_v33 = vpop.f32.mrf.mxu0  ;;  %3689 = vst [vmem:[#allocation22_spill] sm:$0xff] %v2454_v11  ;;  %v2464_v15 = vperm.slane %v2454_v11, 0  ;;  %v2478_v20 = vperm.slane %v2454_v11, 2  ;;  %v2496_v29 = vperm.slane %v2454_v11, 1 }
  0xca   : > { %1843 = vmatmul.msk.f32.gmra.mxu0 %vm419_vm0, %v455_v33 }
  0xcb   : > { %v539_v41 = vpop.f32.mrf.mxu3 }
  0xcc   : > { %v484_v42 = vpop.f32.mrf.mxu1 }
  0xd0   : > { %v513_v35 = vpop.f32.mrf.mxu2 }
  0xd1   : > { %1851 = vmatmul.msk.f32.gmra.mxu1 %vm419_vm0, %v513_v35  ;;  %v458_v37 = vpop.f32.mrf.mxu0 }
  0xd2   : > { %1844 = vmatmul.msk.f32.gmra.mxu0 %vm419_vm0, %v458_v37 }
  0xd3   : > { %v542_v45 = vpop.f32.mrf.mxu3 }
  0xd4   : > { %v487_v47 = vpop.f32.mrf.mxu1 }
  0xd8   : > { %v516_v39 = vpop.f32.mrf.mxu2 }
  0xd9   : > { %1852 = vmatmul.msk.f32.gmra.mxu1 %vm419_vm0, %v516_v39  ;;  %v565_v40 = vpop.f32.mrf.mxu0 }
  0xda   : > { %1845 = vmatmul.msk.f32.gmra.mxu0 %vm419_vm0, %v478_v34  ;;  %1857 = vmatmul.msk.f32.vlgmr.msra.gmra.mxu2 %vm419_vm0, %v565_v40 }
  0xdb   : > { %v545_v49 = vpop.f32.mrf.mxu3 }
  0xdc   : > { %v594_v52 = vpop.f32.mrf.mxu1 }
  0xe0   : > { %v623_v43 = vpop.f32.mrf.mxu2 }
  0xe1   : > { %1853 = vmatmul.msk.f32.gmra.mxu1 %vm419_vm0, %v536_v36  ;;  %1865 = vmatmul.msk.f32.vlgmr.msra.gmra.mxu3 %vm419_vm0, %v623_v43  ;;  %v568_v44 = vpop.f32.mrf.mxu0 }
  0xe2   : > { %1846 = vmatmul.msk.f32.gmra.mxu0 %vm419_vm0, %v481_v38  ;;  %1858 = vmatmul.msk.f32.gmra.mxu2 %vm419_vm0, %v568_v44 }
  0xe3   : > { %v652_v60 = vpop.f32.mrf.mxu3 }
  0xe4   : > { %v597_v63 = vpop.f32.mrf.mxu1 }
  0xe8   : > { %v626_v46 = vpop.f32.mrf.mxu2 }
  0xe9   : > { %1854 = vmatmul.msk.f32.gmra.mxu1 %vm419_vm0, %v539_v41  ;;  %1866 = vmatmul.msk.f32.gmra.mxu3 %vm419_vm0, %v626_v46  ;;  %v571_v48 = vpop.f32.mrf.mxu0 }
  0xea   : > { %1847 = vmatmul.msk.f32.gmra.mxu0 %vm419_vm0, %v484_v42  ;;  %1859 = vmatmul.msk.f32.gmra.mxu2 %vm419_vm0, %v571_v48  ;;  %v2538_v48 = vperm.slane %v2454_v11, 3 }
  0xeb   : > { %v655_v1 = vpop.f32.mrf.mxu3 }
  0xec   : > { %v600_v2 = vpop.f32.mrf.mxu1 }
  0xf0   : > { %v629_v50 = vpop.f32.mrf.mxu2 }
  0xf1   : > { %1855 = vmatmul.msk.f32.gmra.mxu1 %vm419_vm0, %v542_v45  ;;  %1867 = vmatmul.msk.f32.gmra.mxu3 %vm419_vm0, %v629_v50  ;;  %v574_v51 = vpop.f32.mrf.mxu0 }
  0xf2   : > { %1848 = vmatmul.msk.f32.gmra.mxu0 %vm419_vm0, %v487_v47  ;;  %1860 = vmatmul.msk.f32.gmra.mxu2 %vm419_vm0, %v574_v51  ;;  %v2535_v47 = vperm.slane %v2450_v7, 3 }
  0xf3   : > { %v658_v3 = vpop.f32.mrf.mxu3 }
  0xf4   : > { %v603_v4 = vpop.f32.mrf.mxu1 }
  0xf8   : > { %v632_v59 = vpop.f32.mrf.mxu2 }
  0xf9   : > { %1856 = vmatmul.msk.f32.gmra.mxu1 %vm419_vm0, %v545_v49  ;;  %1868 = vmatmul.msk.f32.gmra.mxu3 %vm419_vm0, %v632_v59  ;;  %v2565_v59 = vperm.slane %v2452_v8, 3 }
  0xfa   : > { %1861 = vmatmul.msk.f32.gmra.mxu2 %vm419_vm0, %v594_v52 }
  0xfb   : > { %v661_v5 = vpop.f32.mrf.mxu3 }
 0x101   : > { %1869 = vmatmul.msk.f32.gmra.mxu3 %vm419_vm0, %v652_v60  ;;  %v2568_v60 = vperm.slane %v2456_v12, 3 }
 0x102   : > { %1862 = vmatmul.msk.f32.gmra.mxu2 %vm419_vm0, %v597_v63 }
 0x109   : > { %1870 = vmatmul.msk.f32.gmra.mxu3 %vm419_vm0, %v655_v1  ;;  %v2580_v1 = vperm.slane %v2454_v11, 4 }
 0x10a   : > { %1863 = vmatmul.msk.f32.gmra.mxu2 %vm419_vm0, %v600_v2 }
 0x111   : > { %1871 = vmatmul.msk.f32.gmra.mxu3 %vm419_vm0, %v658_v3 }
 0x112   : > { %1864 = vmatmul.msk.f32.gmra.mxu2 %vm419_vm0, %v603_v4 }
 0x119   : > { %1872 = vmatmul.msk.f32.gmra.mxu3 %vm419_vm0, %v661_v5 }
 0x137   : > { %v777_v6 = vpop.f32.mrf.mxu0 }
 0x138   : > { %v1164_v21 = vmul.f32 %v2461_v14, %v777_v6  ;;  %v1196_v22 = vmul.f32 %v2464_v15, %v777_v6  ;;  %v1228_v25 = vmul.f32 %v2469_v17, %v777_v6  ;;  %v1260_v26 = vmul.f32 %v2472_v18, %v777_v6 }
 0x139   : > { %v2505_v32 = vsel %vm873_vm1, %v777_v6, 0.0  ;;  %v2508_v33 = vsel %vm873_vm1, %v777_v6, -inf }
 0x13a   : > { %v1292_v36 = vsel %vm873_vm1, %v1164_v21, 0.0  ;;  %v2514_v37 = vsel %vm873_vm1, %v1196_v22, 0.0  ;;  %v2521_v41 = vsel %vm873_vm1, %v1228_v25, 0.0  ;;  %v2524_v42 = vsel %vm873_vm1, %v1260_v26, 0.0 }
 0x13b   : > { %v2601_v22 = vperm.slane %v2452_v8, 4 }
 0x13e   : > { %v801_v9 = vpop.f32.mrf.mxu1 }
 0x13f   : > { %v780_v10 = vpop.f32.mrf.mxu0  ;;  %v1172_v34 = vmul.f32 %v2475_v19, %v801_v9  ;;  %v1204_v35 = vmul.f32 %v2478_v20, %v801_v9  ;;  %v1236_v38 = vmul.f32 %v2483_v23, %v801_v9  ;;  %v1268_v39 = vmul.f32 %v2486_v24, %v801_v9 }
 0x140   : > { %v1165_v43 = vmul.f32 %v2461_v14, %v780_v10  ;;  %v1197_v44 = vmul.f32 %v2464_v15, %v780_v10  ;;  %v2529_v45 = vsel %vm873_vm1, %v801_v9, 0.0  ;;  %v2532_v46 = vsel %vm873_vm1, %v801_v9, -inf }
 0x141   : > { %v1295_v49 = vsel %vm873_vm1, %v1172_v34, 0.0  ;;  %v2542_v50 = vsel %vm873_vm1, %v1204_v35, 0.0  ;;  %v1229_v51 = vmul.f32 %v2469_v17, %v780_v10  ;;  %v1261_v52 = vmul.f32 %v2472_v18, %v780_v10 }
 0x142   : > { %3691 = vst [vmem:[#allocation24_spill] sm:$0xff] %v2542_v50  ;;  %v2547_v53 = vsel %vm873_vm1, %v1236_v38, 0.0  ;;  %v2550_v54 = vsel %vm873_vm1, %v1268_v39, 0.0  ;;  %v2553_v55 = vsel %vm873_vm1, %v780_v10, 0.0  ;;  %v2556_v56 = vsel %vm873_vm1, %v780_v10, -inf }
 0x143   : > { %3692 = vst [vmem:[#allocation25_spill] sm:$0xff] %v2547_v53  ;;  %v2559_v57 = vsel %vm873_vm1, %v1165_v43, 0.0  ;;  %v2562_v58 = vsel %vm873_vm1, %v1197_v44, 0.0  ;;  %v2583_v2 = vsel %vm873_vm1, %v1229_v51, 0.0  ;;  %v2586_v3 = vsel %vm873_vm1, %v1261_v52, 0.0 }
 0x144   : > { %3693 = vst [vmem:[#allocation26_spill] sm:$0xff] %v2550_v54  ;;  %v2614_v35 = vperm.slane %v2456_v12, 4  ;;  %v2627_v44 = vperm.slane %v2450_v7, 6 }
 0x146   : > { %v2458_v13 = vpop.f32.mrf.mxu1  ;;  %3697 = vst [vmem:[#allocation30_spill] sm:$0xff] %v2627_v44 }
 0x147   : > { %v2466_v16 = vpop.f32.mrf.mxu0  ;;  %v1173_v61 = vmul.f32 %v2475_v19, %v2458_v13  ;;  %v1205_v62 = vmul.f32 %v2478_v20, %v2458_v13  ;;  %v1237_v4 = vmul.f32 %v2483_v23, %v2458_v13  ;;  %v1269_v5 = vmul.f32 %v2486_v24, %v2458_v13 }
 0x148   : > { %v1166_v6 = vmul.f32 %v2461_v14, %v2466_v16  ;;  %v1198_v9 = vmul.f32 %v2464_v15, %v2466_v16  ;;  %v1230_v10 = vmul.f32 %v2469_v17, %v2466_v16  ;;  %v2605_v25 = vsel %vm873_vm1, %v2458_v13, 0.0 }
 0x149   : > { %3694 = vst [vmem:[#allocation27_spill] sm:$0xff] %v2605_v25  ;;  %v2609_v26 = vsel %vm873_vm1, %v2458_v13, -inf  ;;  %v1262_v34 = vmul.f32 %v2472_v18, %v2466_v16  ;;  %v2617_v38 = vsel %vm873_vm1, %v1173_v61, 0.0  ;;  %v2620_v39 = vsel %vm873_vm1, %v1205_v62, 0.0 }
 0x14a   : > { %3695 = vst [vmem:[#allocation28_spill] sm:$0xff] %v2609_v26  ;;  %v2624_v43 = vsel %vm873_vm1, %v2466_v16, 0.0  ;;  %v2630_v13 = vsel %vm873_vm1, %v1237_v4, 0.0  ;;  %v2633_v51 = vsel %vm873_vm1, %v1269_v5, 0.0  ;;  %v2637_v52 = vsel %vm873_vm1, %v2466_v16, -inf }
 0x14b   : > { %3696 = vst [vmem:[#allocation29_spill] sm:$0xff] %v2624_v43  ;;  %v2642_v62 = vsel %vm873_vm1, %v1166_v6, 0.0  ;;  %v2645_v53 = vsel %vm873_vm1, %v1198_v9, 0.0  ;;  %v2648_v54 = vsel %vm873_vm1, %v1230_v10, 0.0  ;;  %v2653_v5 = vsel %vm873_vm1, %v1262_v34, 0.0 }
 0x14c   : > { %3698 = vst [vmem:[#allocation31_spill] sm:$0xff] %v2637_v52 }
 0x14e   : > { %v2490_v27 = vpop.f32.mrf.mxu1 }
 0x14f   : > { %v2518_v40 = vpop.f32.mrf.mxu0  ;;  %v1174_v4 = vmul.f32 %v2475_v19, %v2490_v27  ;;  %v1206_v16 = vmul.f32 %v2478_v20, %v2490_v27  ;;  %v1238_v50 = vmul.f32 %v2483_v23, %v2490_v27  ;;  %v2662_v9 = vsel %vm873_vm1, %v2490_v27, 0.0 }
 0x150   : > { %3699 = vst [vmem:[#allocation32_spill] sm:$0xff] %v2662_v9  ;;  %v2666_v10 = vsel %vm873_vm1, %v2490_v27, -inf  ;;  %v1270_v34 = vmul.f32 %v2486_v24, %v2490_v27  ;;  %v1167_v43 = vmul.f32 %v2461_v14, %v2518_v40  ;;  %v2679_v9 = vperm.slane %v2454_v11, 6 }
 0x151   : > { %3700 = vst [vmem:[#allocation33_spill] sm:$0xff] %v2666_v10  ;;  %v2682_v10 = vsel %vm873_vm1, %v1174_v4, 0.0  ;;  %v1231_v27 = vmul.f32 %v2469_v17, %v2518_v40  ;;  %v2689_v14 = vperm.slane %v2452_v8, 6 }
 0x152   : > { %3701 = vst [vmem:[#allocation34_spill] sm:$0xff] %v2679_v9  ;;  %v2699_v4 = vsel %vm873_vm1, %v1270_v34, 0.0 }
 0x153   : > { %3702 = vst [vmem:[#allocation35_spill] sm:$0xff] %v2689_v14 }
 0x156   : > { %v2574_v63 = vpop.f32.mrf.mxu1 }
 0x157   : > { %v2598_v21 = vpop.f32.mrf.mxu0  ;;  %v1175_v8 = vmul.f32 %v2475_v19, %v2574_v63 }
 0x158   : > { %v1168_v61 = vmul.f32 %v2493_v28, %v2598_v21 }
 0x15a   : > { %v1293_v6 = vsel %vm873_vm1, %v1168_v61, 0.0  ;;  %v1199_v61 = vmul.f32 %v2464_v15, %v2518_v40  ;;  %v2692_v15 = vsel %vm873_vm1, %v1206_v16, 0.0  ;;  %v2710_v16 = vsel %vm873_vm1, %v2518_v40, 0.0 }
 0x15b   : > { %v1294_v7 = vadd.f32 %v1293_v6, %v1292_v36  ;;  %v1263_v36 = vmul.f32 %v2472_v18, %v2518_v40  ;;  %v2695_v6 = vsel %vm873_vm1, %v1238_v50, 0.0  ;;  %v2706_v18 = vperm.slane %v2456_v12, 6  ;;  %3704 = vst [vmem:[#allocation37_spill] sm:$0xff] %v2710_v16 }
 0x15c   : > { %v2714_v50 = vsel %vm873_vm1, %v2518_v40, -inf  ;;  %v2722_v34 = vsel %vm873_vm1, %v1199_v61, 0.0  ;;  %v2726_v12 = vsel %vm873_vm1, %v2574_v63, 0.0  ;;  %v2731_v40 = vsel %vm873_vm1, %v1231_v27, 0.0 }
 0x15d   : > { %v1296_v11 = vadd.f32 %v1295_v49, %v1294_v7  ;;  %v2701_v25 = vpop.f32.mrf.mxu2  ;;  %3703 = vst [vmem:[#allocation36_spill] sm:$0xff] %v2706_v18 }
 0x15e   : > { %v2670_v52 = vpop.f32.mrf.mxu1  ;;  %3705 = vst [vmem:[#allocation38_spill] sm:$0xff] %v2714_v50  ;;  %v1180_v49 = vmul.f32 %v2577_v0, %v2701_v25 }
 0x15f   : > { %v1176_v26 = vmul.f32 %v2535_v47, %v2670_v52  ;;  %v2703_v17 = vpop.f32.mrf.mxu0  ;;  %3706 = vst [vmem:[#allocation39_spill] sm:$0xff] %v2726_v12 }
 0x160   : > { %3707 = vst [vmem:[#allocation40_spill] sm:$0xff] %v2731_v40  ;;  %v1299_v61 = vsel %vm873_vm1, %v1180_v49, 0.0  ;;  %v1169_v12 = vmul.f32 %v2493_v28, %v2703_v17  ;;  %v1201_v19 = vmul.f32 %v2496_v29, %v2703_v17  ;;  %v1233_v27 = vmul.f32 %v2499_v30, %v2703_v17 }
 0x161   : > { %v1297_v9 = vsel %vm873_vm1, %v1176_v26, 0.0  ;;  %v2719_v26 = vsel %vm873_vm1, %v1167_v43, 0.0  ;;  %v1207_v43 = vmul.f32 %v2478_v20, %v2574_v63  ;;  %v2753_v20 = vsel %vm873_vm1, %v2574_v63, -inf }
 0x162   : > { %v1298_v7 = vadd.f32 %v1297_v9, %v1296_v11  ;;  %v2734_v11 = vsel %vm873_vm1, %v1263_v36, 0.0  ;;  %v1239_v9 = vmul.f32 %v2483_v23, %v2574_v63  ;;  %v1265_v36 = vmul.f32 %v2502_v31, %v2703_v17  ;;  %3710 = vst [vmem:[#allocation43_spill] sm:$0xff] %v2753_v20 }
 0x163   : > { %3708 = vst [vmem:[#allocation41_spill] sm:$0xff] %v2734_v11  ;;  %v1271_v23 = vmul.f32 %v2486_v24, %v2574_v63  ;;  %v1308_v49 = vsel %vm873_vm1, %v1169_v12, 0.0  ;;  %v1428_v16 = vsel %vm873_vm1, %v1233_v27, 0.0  ;;  %v2767_v20 = vsel %vm873_vm1, %v1175_v8, 0.0 }
 0x164   : > { %v2743_v50 = vadd.f32 %v1299_v61, %v1298_v7  ;;  %v875_v7 = vsel %vm873_vm1, %v2598_v21, 0.0  ;;  %v1309_v61 = vadd.f32 %v1308_v49, %v2559_v57  ;;  %v1488_v18 = vsel %vm873_vm1, %v1265_v36, 0.0  ;;  %3711 = vst [vmem:[#allocation44_spill] sm:$0xff] %v2767_v20 }
 0x165   : > { %v2770_v24 = vsel %vm873_vm1, %v1207_v43, 0.0  ;;  %v1429_v12 = vadd.f32 %v1428_v16, %v2583_v2  ;;  %v2775_v57 = vsel %vm873_vm1, %v1239_v9, 0.0  ;;  %v946_v27 = vsel %vm873_vm1, %v2598_v21, -inf  ;;  %v2803_v40 = vpop.f32.mrf.mxu2 }
 0x166   : > { %3709 = vst [vmem:[#allocation42_spill] sm:$0xff] %v2743_v50  ;;  %v1368_v50 = vsel %vm873_vm1, %v1201_v19, 0.0  ;;  %v2764_v14 = vpop.f32.mrf.mxu1  ;;  %v876_v19 = vadd.f32 %v875_v7, %v2505_v32  ;;  %v1489_v36 = vadd.f32 %v1488_v18, %v2586_v3  ;;  %v1200_v32 = vmul.f32 %v2496_v29, %v2598_v21 }
 0x167   : > { %3712 = vst [vmem:[#allocation45_spill] sm:$0xff] %v2770_v24  ;;  %v1369_v63 = vadd.f32 %v1368_v50, %v2562_v58  ;;  %v1177_v8 = vmul.f32 %v2535_v47, %v2764_v14  ;;  %v1209_v43 = vmul.f32 %v2538_v48, %v2764_v14  ;;  %v1241_v58 = vmul.f32 %v2565_v59, %v2764_v14 }
 0x168   : > { %3713 = vst [vmem:[#allocation46_spill] sm:$0xff] %v2775_v57  ;;  %v1273_v2 = vmul.f32 %v2568_v60, %v2764_v14  ;;  %v1232_v16 = vmul.f32 %v2499_v30, %v2598_v21  ;;  %v1311_v3 = vadd.f32 %v2617_v38, %v1309_v61  ;;  %v1431_v7 = vadd.f32 %v2630_v13, %v1429_v12  ;;  %v2809_v61 = vpop.f32.mrf.mxu3 }
 0x169   : > { %v1371_v18 = vadd.f32 %v2620_v39, %v1369_v63  ;;  %v1312_v50 = vsel %vm873_vm1, %v1177_v8, 0.0  ;;  %v1372_v9 = vsel %vm873_vm1, %v1209_v43, 0.0  ;;  %v1432_v49 = vsel %vm873_vm1, %v1241_v58, 0.0  ;;  %v2822_v43 = vpop.f32.mrf.mxu0 }
 0x16a   : > { %v1264_v57 = vmul.f32 %v2502_v31, %v2598_v21  ;;  %v1313_v24 = vadd.f32 %v1312_v50, %v1311_v3  ;;  %v1491_v20 = vadd.f32 %v2633_v51, %v1489_v36  ;;  %v1492_v11 = vsel %vm873_vm1, %v1273_v2, 0.0 }
 0x16b   : > { %v2806_v38 = vsel %vm873_vm1, %v1271_v23, 0.0  ;;  %v947_v39 = vmax.f32 %v2508_v33, %v946_v27  ;;  %v1373_v13 = vadd.f32 %v1372_v9, %v1371_v18  ;;  %v1181_v63 = vmul.f32 %v2577_v0, %v2803_v40 }
 0x16c   : > { %v878_v21 = vadd.f32 %v2529_v45, %v876_v19  ;;  %v1433_v12 = vadd.f32 %v1432_v49, %v1431_v7  ;;  %v1493_v8 = vadd.f32 %v1492_v11, %v1491_v20  ;;  %v1213_v51 = vmul.f32 %v2580_v1, %v2803_v40 }
 0x16d   : > { %v1353_v36 = vsel %vm873_vm1, %v1200_v32, 0.0  ;;  %v1245_v23 = vmul.f32 %v2601_v22, %v2803_v40  ;;  %v1277_v33 = vmul.f32 %v2614_v35, %v2803_v40  ;;  %v1314_v27 = vsel %vm873_vm1, %v1181_v63, 0.0 }
 0x16e   : > { %v1413_v58 = vsel %vm873_vm1, %v1232_v16, 0.0  ;;  %v1473_v45 = vsel %vm873_vm1, %v1264_v57, 0.0  ;;  %v2826_v11 = vadd.f32 %v1314_v27, %v1313_v24  ;;  %v1374_v20 = vsel %vm873_vm1, %v1213_v51, 0.0 }
 0x16f   : > { %v879_v19 = vsel %vm873_vm1, %v2670_v52, 0.0  ;;  %v2831_v2 = vadd.f32 %v1374_v20, %v1373_v13  ;;  %v1434_v32 = vsel %vm873_vm1, %v1245_v23, 0.0  ;;  %v1494_v3 = vsel %vm873_vm1, %v1277_v33, 0.0 }
 0x170   : > { %v2835_v18 = vadd.f32 %v1434_v32, %v1433_v12  ;;  %v2837_v50 = vadd.f32 %v1494_v3, %v1493_v8  ;;  %v1170_v57 = vmul.f32 %v2493_v28, %v2822_v43  ;;  %v1202_v24 = vmul.f32 %v2496_v29, %v2822_v43 }
 0x171   : > { %v950_v16 = vsel %vm873_vm1, %v2670_v52, -inf  ;;  %v1208_v9 = vmul.f32 %v2538_v48, %v2670_v52  ;;  %v1234_v7 = vmul.f32 %v2499_v30, %v2822_v43  ;;  %v1266_v49 = vmul.f32 %v2502_v31, %v2822_v43 }
 0x172   : > { %v1240_v13 = vmul.f32 %v2565_v59, %v2670_v52  ;;  %v1272_v63 = vmul.f32 %v2568_v60, %v2670_v52  ;;  %v1323_v12 = vsel %vm873_vm1, %v1170_v57, 0.0  ;;  %v1383_v8 = vsel %vm873_vm1, %v1202_v24, 0.0  ;;  %v2868_v57 = vpop.f32.mrf.mxu1 }
 0x173   : > { %v2858_v51 = vadd.f32 %v1353_v36, %v2514_v37  ;;  %v949_v23 = vmax.f32 %v947_v39, %v2532_v46  ;;  %v1443_v33 = vsel %vm873_vm1, %v1234_v7, 0.0  ;;  %v1503_v27 = vsel %vm873_vm1, %v1266_v49, 0.0  ;;  %v2876_v36 = vpop.f32.mrf.mxu3 }
 0x174   : > { %v2864_v20 = vadd.f32 %v1413_v58, %v2521_v41  ;;  %v880_v32 = vadd.f32 %v879_v19, %v878_v21  ;;  %v1324_v3 = vadd.f32 %v1323_v12, %v2642_v62  ;;  %v1384_v52 = vadd.f32 %v1383_v8, %v2645_v53  ;;  %v2906_v12 = vpop.f32.mrf.mxu2 }
 0x175   : > { %v2871_v24 = vadd.f32 %v1473_v45, %v2524_v42  ;;  %v951_v37 = vmax.f32 %v949_v23, %v950_v16  ;;  %v881_v46 = vsel %vm873_vm1, %v2701_v25, 0.0  ;;  %v1444_v39 = vadd.f32 %v1443_v33, %v2648_v54 }
 0x176   : > { %v2879_v41 = vsel %vm873_vm1, %v1208_v9, 0.0  ;;  %v2882_v62 = vsel %vm873_vm1, %v1240_v13, 0.0  ;;  %v2885_v53 = vsel %vm873_vm1, %v1272_v63, 0.0  ;;  %v1504_v42 = vadd.f32 %v1503_v27, %v2653_v5 }
 0x177   : > { %v952_v21 = vsel %vm873_vm1, %v2701_v25, -inf  ;;  %v1178_v58 = vmul.f32 %v2535_v47, %v2868_v57  ;;  %v1210_v54 = vmul.f32 %v2538_v48, %v2868_v57  ;;  %v1242_v45 = vmul.f32 %v2565_v59, %v2868_v57 }
 0x178   : > { %v2896_v19 = vadd.f32 %v881_v46, %v880_v32  ;;  %v1274_v16 = vmul.f32 %v2568_v60, %v2868_v57  ;;  %v1326_v9 = vadd.f32 %v2682_v10, %v1324_v3  ;;  %v1386_v5 = vadd.f32 %v2692_v15, %v1384_v52 }
 0x179   : > { %v1327_v7 = vsel %vm873_vm1, %v1178_v58, 0.0  ;;  %v1387_v49 = vsel %vm873_vm1, %v1210_v54, 0.0  ;;  %v1446_v13 = vadd.f32 %v2695_v6, %v1444_v39  ;;  %v1447_v63 = vsel %vm873_vm1, %v1242_v45, 0.0  ;;  %v798_v58 = vpop.f32.mrf.mxu0 }
 0x17a   : > { %v2908_v8 = vmax.f32 %v951_v37, %v952_v21  ;;  %v1328_v23 = vadd.f32 %v1327_v7, %v1326_v9  ;;  %v1506_v33 = vadd.f32 %v2699_v4, %v1504_v42  ;;  %v1507_v27 = vsel %vm873_vm1, %v1274_v16, 0.0 }
 0x17b   : > { %v2914_v10 = vmul.f32 %v2580_v1, %v2701_v25  ;;  %v890_v15 = vsel %vm873_vm1, %v2703_v17, 0.0  ;;  %v1388_v32 = vadd.f32 %v1387_v49, %v1386_v5  ;;  %v1182_v6 = vmul.f32 %v2577_v0, %v2906_v12 }
 0x17c   : > { %v961_v3 = vsel %vm873_vm1, %v2703_v17, -inf  ;;  %v1448_v52 = vadd.f32 %v1447_v63, %v1446_v13  ;;  %v1508_v37 = vadd.f32 %v1507_v27, %v1506_v33  ;;  %v1214_v4 = vmul.f32 %v2580_v1, %v2906_v12  ;;  %v2946_v13 = vpop.f32.mrf.mxu3 }
 0x17d   : > { %v2926_v46 = vmul.f32 %v2601_v22, %v2701_v25  ;;  %v1246_v39 = vmul.f32 %v2601_v22, %v2906_v12  ;;  %v1278_v42 = vmul.f32 %v2614_v35, %v2906_v12  ;;  %v1329_v21 = vsel %vm873_vm1, %v1182_v6, 0.0 }
 0x17e   : > { %v2935_v17 = vmul.f32 %v2614_v35, %v2701_v25  ;;  %v891_v54 = vadd.f32 %v890_v15, %v2553_v55  ;;  %v2938_v45 = vadd.f32 %v1329_v21, %v1328_v23  ;;  %v1389_v16 = vsel %vm873_vm1, %v1214_v4, 0.0  ;;  %v3721_v21 = vld [vmem:[#allocation29_spill] sm:$0xff] }
 0x17f   : > { %v962_v9 = vmax.f32 %v2556_v56, %v961_v3  ;;  %v2942_v5 = vadd.f32 %v1389_v16, %v1388_v32  ;;  %v1449_v7 = vsel %vm873_vm1, %v1246_v39, 0.0  ;;  %v1509_v49 = vsel %vm873_vm1, %v1278_v42, 0.0  ;;  %v3718_v32 = vld [vmem:[#allocation27_spill] sm:$0xff]  ;;  %v3720_v39 = vld [vmem:[#allocation28_spill] sm:$0xff] }
 0x180   : > { %3714 = vst [vmem:[#allocation47_spill] sm:$0xff] %v2938_v45  ;;  %v2948_v63 = vadd.f32 %v1449_v7, %v1448_v52  ;;  %v2950_v25 = vadd.f32 %v1509_v49, %v1508_v37  ;;  %v1171_v55 = vmul.f32 %v2493_v28, %v798_v58  ;;  %v1203_v23 = vmul.f32 %v2496_v29, %v798_v58  ;;  %v3722_v49 = vld [vmem:[#allocation31_spill] sm:$0xff] }
 0x181   : > { %3715 = vst [vmem:[#allocation48_spill] sm:$0xff] %v2942_v5  ;;  %v1188_v33 = vmul.f32 %v2627_v44, %v2809_v61  ;;  %v905_v56 = vsel %vm873_vm1, %v2822_v43, 0.0  ;;  %v1235_v27 = vmul.f32 %v2499_v30, %v798_v58  ;;  %v1267_v15 = vmul.f32 %v2502_v31, %v798_v58  ;;  %v2971_v31 = vpop.f32.mrf.mxu2 }
 0x182   : > { %3716 = vst [vmem:[#allocation49_spill] sm:$0xff] %v2948_v63  ;;  %v893_v6 = vadd.f32 %v3718_v32, %v891_v54  ;;  %v976_v3 = vsel %vm873_vm1, %v2822_v43, -inf  ;;  %v1338_v52 = vsel %vm873_vm1, %v1171_v55, 0.0  ;;  %v1398_v28 = vsel %vm873_vm1, %v1203_v23, 0.0  ;;  %v3723_v23 = vld [vmem:[#allocation40_spill] sm:$0xff] }
 0x183   : > { %3717 = vst [vmem:[#allocation50_spill] sm:$0xff] %v2950_v25  ;;  %v894_v29 = vsel %vm873_vm1, %v2764_v14, 0.0  ;;  %v965_v37 = vsel %vm873_vm1, %v2764_v14, -inf  ;;  %v1458_v4 = vsel %vm873_vm1, %v1235_v27, 0.0  ;;  %v1518_v30 = vsel %vm873_vm1, %v1267_v15, 0.0  ;;  %v3731_v25 = vld [vmem:[#allocation46_spill] sm:$0xff] }
 0x184   : > { %3719 = vst [vmem:[#allocation27_spill] sm:$0xff] %v2971_v31  ;;  %v964_v42 = vmax.f32 %v962_v9, %v3720_v39  ;;  %v906_v43 = vadd.f32 %v905_v56, %v3721_v21  ;;  %v1339_v54 = vadd.f32 %v1338_v52, %v2719_v26  ;;  %v1399_v16 = vadd.f32 %v1398_v28, %v2722_v34  ;;  %v3724_v26 = vld [vmem:[#allocation41_spill] sm:$0xff]  ;;  %v3729_v21 = vld [vmem:[#allocation35_spill] sm:$0xff] }
 0x185   : > { %v2979_v7 = vsel %vm873_vm1, %v2809_v61, 0.0  ;;  %v2983_v14 = vsel %vm873_vm1, %v2809_v61, -inf  ;;  %v977_v55 = vmax.f32 %v3722_v49, %v976_v3  ;;  %v1459_v27 = vadd.f32 %v1458_v4, %v3723_v23  ;;  %v3725_v4 = vld [vmem:[#allocation32_spill] sm:$0xff]  ;;  %v3730_v23 = vld [vmem:[#allocation33_spill] sm:$0xff] }
 0x186   : > { %v2988_v9 = vsel %vm873_vm1, %v1188_v33, 0.0  ;;  %v895_v56 = vadd.f32 %v894_v29, %v893_v6  ;;  %v966_v15 = vmax.f32 %v964_v42, %v965_v37  ;;  %v1519_v32 = vadd.f32 %v1518_v30, %v3724_v26  ;;  %v3726_v6 = vld [vmem:[#allocation44_spill] sm:$0xff]  ;;  %v3727_v37 = vld [vmem:[#allocation45_spill] sm:$0xff]  ;;  %v3728_v42 = vld [vmem:[#allocation34_spill] sm:$0xff] }
 0x187   : > { %v896_v34 = vsel %vm873_vm1, %v2803_v40, 0.0  ;;  %v967_v52 = vsel %vm873_vm1, %v2803_v40, -inf  ;;  %v1189_v28 = vmul.f32 %v2627_v44, %v2876_v36  ;;  %v909_v3 = vsel %vm873_vm1, %v2868_v57, 0.0 }
 0x188   : > { %v908_v39 = vadd.f32 %v3725_v4, %v906_v43  ;;  %v980_v33 = vsel %vm873_vm1, %v2868_v57, -inf  ;;  %v3003_v29 = vadd.f32 %v3726_v6, %v1339_v54  ;;  %v3006_v30 = vadd.f32 %v3727_v37, %v1399_v16  ;;  %v3016_v43 = vpop.f32.mrf.mxu3  ;;  %v3733_v57 = vld [vmem:[#allocation36_spill] sm:$0xff] }
 0x189   : > { %v1221_v40 = vmul.f32 %v3728_v42, %v2876_v36  ;;  %v1253_v49 = vmul.f32 %v3729_v21, %v2876_v36  ;;  %v979_v26 = vmax.f32 %v977_v55, %v3730_v23  ;;  %v3014_v63 = vadd.f32 %v3731_v25, %v1459_v27  ;;  %3732 = vst [vmem:[#allocation28_spill] sm:$0xff] %v3016_v43  ;;  %v3027_v25 = vpop.f32.mrf.mxu1 }
 0x18a   : > { %v1285_v54 = vmul.f32 %v3733_v57, %v2876_v36  ;;  %v910_v4 = vadd.f32 %v909_v3, %v908_v39  ;;  %v920_v16 = vsel %vm873_vm1, %v798_v58, 0.0  ;;  %v1521_v6 = vadd.f32 %v2806_v38, %v1519_v32  ;;  %v3739_v32 = vld [vmem:[#allocation37_spill] sm:$0xff] }
 0x18b   : > { %v3022_v37 = vadd.f32 %v896_v34, %v895_v56  ;;  %v981_v5 = vmax.f32 %v979_v26, %v980_v33  ;;  %v911_v45 = vsel %vm873_vm1, %v2906_v12, 0.0  ;;  %v991_v55 = vsel %vm873_vm1, %v798_v58, -inf  ;;  %v3742_v33 = vld [vmem:[#allocation38_spill] sm:$0xff] }
 0x18c   : > { %v3029_v27 = vmax.f32 %v966_v15, %v967_v52  ;;  %v3033_v23 = vsel %vm873_vm1, %v2876_v36, 0.0  ;;  %v3037_v3 = vsel %vm873_vm1, %v2876_v36, -inf  ;;  %v982_v38 = vsel %vm873_vm1, %v2906_v12, -inf  ;;  %v837_v52 = vpop.f32.mrf.mxu2 }
 0x18d   : > { %3734 = vst [vmem:[#allocation29_spill] sm:$0xff] %v3033_v23  ;;  %v3042_v56 = vsel %vm873_vm1, %v1189_v28, 0.0  ;;  %v3045_v58 = vsel %vm873_vm1, %v1221_v40, 0.0  ;;  %v3048_v15 = vsel %vm873_vm1, %v1253_v49, 0.0  ;;  %v921_v34 = vadd.f32 %v920_v16, %v3739_v32  ;;  %v3754_v23 = vld [vmem:[#allocation23_spill] sm:$0xff] }
 0x18e   : > { %3735 = vst [vmem:[#allocation31_spill] sm:$0xff] %v3037_v3  ;;  %v3052_v39 = vsel %vm873_vm1, %v1285_v54, 0.0  ;;  %v3054_v36 = vadd.f32 %v911_v45, %v910_v4  ;;  %v992_v26 = vmax.f32 %v3742_v33, %v991_v55  ;;  %v1179_v12 = vmul.f32 %v2535_v47, %v3027_v25  ;;  %v3748_v33 = vld [vmem:[#allocation43_spill] sm:$0xff]  ;;  %v3753_v3 = vld [vmem:[#allocation21_spill] sm:$0xff] }
 0x18f   : > { %3736 = vst [vmem:[#allocation40_spill] sm:$0xff] %v3042_v56  ;;  %v3059_v28 = vmax.f32 %v981_v5, %v982_v38  ;;  %v3063_v40 = vsel %vm873_vm1, %v2946_v13, 0.0  ;;  %v3067_v49 = vmul.f32 %v2627_v44, %v2946_v13  ;;  %v1211_v54 = vmul.f32 %v2538_v48, %v3027_v25  ;;  %v3745_v5 = vld [vmem:[#allocation20_spill] sm:$0xff] }
 0x190   : > { %3737 = vst [vmem:[#allocation41_spill] sm:$0xff] %v3045_v58  ;;  %v1243_v45 = vmul.f32 %v2565_v59, %v3027_v25  ;;  %v1275_v4 = vmul.f32 %v2568_v60, %v3027_v25  ;;  %v954_v47 = vsel %vm873_vm1, %v837_v52, -inf  ;;  %v3077_v16 = vperm.slane %v3745_v5, 5  ;;  %v3747_v59 = vld [vmem:[#allocation39_spill] sm:$0xff] }
 0x191   : > { %3738 = vst [vmem:[#allocation32_spill] sm:$0xff] %v3048_v15  ;;  %v3081_v55 = vmul.f32 %v3728_v42, %v2946_v13  ;;  %v3085_v38 = vmul.f32 %v3729_v21, %v2946_v13  ;;  %v3089_v48 = vmul.f32 %v3733_v57, %v2946_v13  ;;  %v3092_v32 = vadd.f32 %v3747_v59, %v921_v34  ;;  %v3108_v59 = vpop.f32.mrf.mxu3 }
 0x192   : > { %3740 = vst [vmem:[#allocation44_spill] sm:$0xff] %v3052_v39  ;;  %v3096_v60 = vsel %vm873_vm1, %v3027_v25, 0.0  ;;  %v1402_v44 = vsel %vm873_vm1, %v1211_v54, 0.0  ;;  %v883_v43 = vsel %vm873_vm1, %v837_v52, 0.0  ;;  %v955_v34 = vmax.f32 %v2908_v8, %v954_v47  ;;  %v3750_v8 = vld [vmem:[#allocation42_spill] sm:$0xff] }
 0x193   : > { %3741 = vst [vmem:[#allocation45_spill] sm:$0xff] %v3054_v36  ;;  %v1184_v36 = vmul.f32 %v3077_v16, %v837_v52  ;;  %v1462_v39 = vsel %vm873_vm1, %v1243_v45, 0.0  ;;  %v1522_v15 = vsel %vm873_vm1, %v1275_v4, 0.0  ;;  %v1215_v54 = vmul.f32 %v2580_v1, %v2971_v31 }
 0x194   : > { %3743 = vst [vmem:[#allocation34_spill] sm:$0xff] %v3059_v28  ;;  %v1342_v28 = vsel %vm873_vm1, %v1179_v12, 0.0  ;;  %v2167_v58 = vmov 8.0   ;;  %v1279_v45 = vmul.f32 %v2614_v35, %v2971_v31  ;;  %v884_v4 = vadd.f32 %v883_v43, %v2896_v19 }
 0x195   : > { %3744 = vst [vmem:[#allocation35_spill] sm:$0xff] %v3063_v40  ;;  %v3099_v40 = vmax.f32 %v992_v26, %v3748_v33  ;;  %v1183_v26 = vmul.f32 %v2577_v0, %v2971_v31  ;;  %v1301_v12 = vsel %vm873_vm1, %v1184_v36, 0.0  ;;  %v1247_v33 = vmul.f32 %v2601_v22, %v2971_v31  ;;  %v3751_v0 = vld [vmem:[#allocation22_spill] sm:$0xff] }
 0x196   : > { %3746 = vst [vmem:[#allocation33_spill] sm:$0xff] %v3077_v16  ;;  %v1302_v47 = vadd.f32 %v1301_v12, %v3750_v8  ;;  %1978 = vrcp.f32 %v2167_v58  ;;  %v3126_v56 = vperm.slane %v3751_v0, 5  ;;  %v958_v36 = vsel %vm873_vm1, %v3108_v59, -inf }
 0x197   : > { %3749 = vst [vmem:[#allocation46_spill] sm:$0xff] %v3108_v59  ;;  %v3131_v1 = vperm.slane %v3753_v3, 5  ;;  %v3134_v22 = vperm.slane %v3754_v23, 5  ;;  %v957_v58 = vmax.f32 %v955_v34, %v2983_v14  ;;  %v1343_v35 = vadd.f32 %v1342_v28, %v3003_v29  ;;  %v840_v3 = vpop.f32.mrf.mxu2 }
 0x198   : > { %3752 = vst [vmem:[#allocation36_spill] sm:$0xff] %v3126_v56  ;;  %v3138_v12 = vadd.f32 %v2988_v9, %v1302_v47  ;;  %v3142_v19 = vadd.f32 %v1402_v44, %v3006_v30  ;;  %v3145_v43 = vadd.f32 %v1462_v39, %v3014_v63  ;;  %v3147_v8 = vadd.f32 %v1522_v15, %v1521_v6 }
 0x199   : > { %v1344_v23 = vsel %vm873_vm1, %v1183_v26, 0.0  ;;  %v1404_v0 = vsel %vm873_vm1, %v1215_v54, 0.0  ;;  %v887_v14 = vsel %vm873_vm1, %v3108_v59, 0.0  ;;  %v959_v9 = vmax.f32 %v957_v58, %v958_v36  ;;  %v3757_v36 = vld [vmem:[#allocation24_spill] sm:$0xff] }
 0x19a   : > { %3755 = vst [vmem:[#allocation37_spill] sm:$0xff] %v3138_v12  ;;  %v1464_v29 = vsel %vm873_vm1, %v1247_v33, 0.0  ;;  %v1524_v44 = vsel %vm873_vm1, %v1279_v45, 0.0  ;;  %v886_v30 = vadd.f32 %v2979_v7, %v884_v4  ;;  %v3157_v63 = vstv %s3103_s24 }
 0x19b   : > { %3756 = vst [vmem:[#allocation38_spill] sm:$0xff] %v3157_v63  ;;  %v1216_v15 = vmul.f32 %v3126_v56, %v837_v52  ;;  %v1248_v39 = vmul.f32 %v3131_v1, %v837_v52  ;;  %v1280_v28 = vmul.f32 %v3134_v22, %v837_v52  ;;  %v1185_v34 = vmul.f32 %v3077_v16, %v840_v3 }
 0x19c   : > { %v1979_v6 = vpop.eup %1978  ;;  %v888_v26 = vadd.f32 %v887_v14, %v886_v30  ;;  %v3164_v47 = vstv %s3115_s28  ;;  %v898_v33 = vsel %vm873_vm1, %v840_v3, 0.0  ;;  %v1013_v45 = vmul.f32 %v3157_v63, %v959_v9 }
 0x19d   : > { %v935_v54 = vmul.f32 8.0, %v1979_v6  ;;  %v3169_v7 = vsel %vm873_vm1, %v840_v3, -inf  ;;  %v1217_v4 = vmul.f32 %v3126_v56, %v840_v3  ;;  %v1356_v58 = vadd.f32 %v3757_v36, %v2858_v51  ;;  %v3758_v56 = vld [vmem:[#allocation26_spill] sm:$0xff] }
 0x19e   : > { %v1249_v52 = vmul.f32 %v3131_v1, %v840_v3  ;;  %v1281_v14 = vmul.f32 %v3134_v22, %v840_v3  ;;  %v1359_v30 = vsel %vm873_vm1, %v2914_v10, 0.0  ;;  %v1316_v16 = vsel %vm873_vm1, %v1185_v34, 0.0  ;;  %v3759_v10 = vld [vmem:[#allocation25_spill] sm:$0xff] }
 0x19f   : > { %v936_v12 = vsub.f32 1.0, %v935_v54  ;;  %v1220_v9 = vmul.f32 %v3728_v42, %v2809_v61  ;;  %v1358_v63 = vadd.f32 %v2879_v41, %v1356_v58  ;;  %v1476_v59 = vadd.f32 %v3758_v56, %v2871_v24 }
 0x1a0   : > { %v1361_v51 = vsel %vm873_vm1, %v1216_v15, 0.0  ;;  %v1479_v3 = vsel %vm873_vm1, %v2935_v17, 0.0  ;;  %v1416_v54 = vadd.f32 %v3759_v10, %v2864_v20  ;;  %vm939_vm2 = vweird.f32 %v1979_v6 }
 0x1a1   : > { %v937_v31 = vmul.f32 %v1979_v6, %v936_v12  ;;  %v1360_v34 = vadd.f32 %v1359_v30, %v1358_v63  ;;  %v1478_v36 = vadd.f32 %v2885_v53, %v1476_v59  ;;  %v1419_v41 = vsel %vm873_vm1, %v2926_v46, 0.0 }
 0x1a2   : > { %v1284_v24 = vmul.f32 %v3733_v57, %v2809_v61  ;;  %v1481_v56 = vsel %vm873_vm1, %v1280_v28, 0.0  ;;  %v1418_v12 = vadd.f32 %v2882_v62, %v1416_v54  ;;  %v1252_v20 = vmul.f32 %v3729_v21, %v2809_v61 }
 0x1a3   : > { %v938_v58 = vadd.f32 %v1979_v6, %v937_v31  ;;  %v1362_v15 = vadd.f32 %v1361_v51, %v1360_v34  ;;  %v1480_v17 = vadd.f32 %v1479_v3, %v1478_v36  ;;  %v1421_v63 = vsel %vm873_vm1, %v1248_v39, 0.0 }
 0x1a4   : > { %v1376_v53 = vsel %vm873_vm1, %v1217_v4, 0.0  ;;  %v1363_v46 = vsel %vm873_vm1, %v1220_v9, 0.0  ;;  %v1420_v31 = vadd.f32 %v1419_v41, %v1418_v12  ;;  %v1436_v28 = vsel %vm873_vm1, %v1249_v52, 0.0 }
 0x1a5   : > { %v3201_v30 = vsel %vm939_vm2, %v1979_v6, %v938_v58  ;;  %v3207_v62 = vadd.f32 %v1363_v46, %v1362_v15  ;;  %v1482_v51 = vadd.f32 %v1481_v56, %v1480_v17  ;;  %v1496_v3 = vsel %vm873_vm1, %v1281_v14, 0.0 }
 0x1a6   : > { %v941_v59 = vmul.f32 %v3201_v30, %v888_v26  ;;  %v1483_v61 = vsel %vm873_vm1, %v1284_v24, 0.0  ;;  %v1422_v39 = vadd.f32 %v1421_v63, %v1420_v31  ;;  %v3211_v6 = vadd.f32 %v1344_v23, %v1343_v35  ;;  %v3767_v24 = vld [vmem:[#allocation44_spill] sm:$0xff] }
 0x1a7   : > { %v3214_v4 = vadd.f32 %v1483_v61, %v1482_v51  ;;  %v1423_v9 = vsel %vm873_vm1, %v1252_v20, 0.0  ;;  %v3218_v26 = vadd.f32 %v1404_v0, %v3142_v19  ;;  %v3221_v52 = vstv %s3184_s12  ;;  %v3770_v63 = vld [vmem:[#allocation28_spill] sm:$0xff]  ;;  %v843_v51 = vpop.f32.mrf.mxu2 }
 0x1a8   : > { %v1007_v10 = vmul.f32 %v3164_v47, %v941_v59  ;;  %v3223_v54 = vadd.f32 %v1423_v9, %v1422_v39  ;;  %v3226_v14 = vadd.f32 %v1464_v29, %v3145_v43  ;;  %v3229_v34 = vadd.f32 %v1524_v44, %v3147_v8  ;;  %v3762_v44 = vld [vmem:[#allocation31_spill] sm:$0xff]  ;;  %v3772_v39 = vld [vmem:[#allocation46_spill] sm:$0xff] }
 0x1a9   : > { %v3233_v23 = vsel %vm873_vm1, %v3027_v25, -inf  ;;  %v899_v36 = vadd.f32 %v898_v33, %v3022_v37  ;;  %v970_v0 = vmax.f32 %v3029_v27, %v3169_v7  ;;  %v1317_v19 = vadd.f32 %v1316_v16, %v2826_v11  ;;  %v3761_v16 = vld [vmem:[#allocation29_spill] sm:$0xff]  ;;  %v3274_v33 = vpop.f32.mrf.mxu3  ;;  %v3773_v9 = vld [vmem:[#allocation22_spill] sm:$0xff] }
 0x1aa   : > { %3760 = vst [vmem:[#allocation20_spill] sm:$0xff] %v3229_v34  ;;  %v1017_v35 = vadd.f32 %v1013_v45, %v1007_v10  ;;  %v1377_v41 = vadd.f32 %v1376_v53, %v2831_v2  ;;  %v1437_v43 = vadd.f32 %v1436_v28, %v2835_v18  ;;  %v1497_v29 = vadd.f32 %v1496_v3, %v2837_v50  ;;  %v3763_v45 = vld [vmem:[#allocation40_spill] sm:$0xff]  ;;  %v3764_v7 = vld [vmem:[#allocation41_spill] sm:$0xff]  ;;  %v3771_v53 = vld [vmem:[#allocation30_spill] sm:$0xff] }
 0x1ab   : > { %v3244_v8 = vsel %vm873_vm1, %v2946_v13, -inf  ;;  %v3248_v25 = vsel %vm873_vm1, %v3067_v49, 0.0  ;;  %v3252_v37 = vsel %vm873_vm1, %v3081_v55, 0.0  ;;  %v3257_v2 = vsel %vm873_vm1, %v3085_v38, 0.0 }
 0x1ac   : > { %v1023_v11 = vadd.f32 %v3221_v52, %v1017_v35  ;;  %v3261_v18 = vsel %vm873_vm1, %v3089_v48, 0.0  ;;  %v3265_v50 = vadd.f32 %v3096_v60, %v3092_v32  ;;  %v3270_v49 = vperm.slane %v3745_v5, 7  ;;  %v3765_v32 = vld [vmem:[#allocation32_spill] sm:$0xff]  ;;  %v3769_v5 = vld [vmem:[#allocation27_spill] sm:$0xff] }
 0x1ad   : > { %v901_v55 = vadd.f32 %v3761_v16, %v899_v36  ;;  %v972_v38 = vmax.f32 %v970_v0, %v3762_v44  ;;  %v3277_v48 = vadd.f32 %v3763_v45, %v1317_v19  ;;  %v3280_v58 = vadd.f32 %v3764_v7, %v1377_v41  ;;  %v3774_v36 = vld [vmem:[#allocation23_spill] sm:$0xff]  ;;  %v3337_v7 = vpop.permute.xlu2 %1542 }
 0x1ae   : > { %v1027_v27 = vsub.f32 0.0, %v1023_v11  ;;  %v3283_v60 = vadd.f32 %v3765_v32, %v1437_v43  ;;  %v3286_v56 = vadd.f32 %v3767_v24, %v1497_v29  ;;  %v3290_v12 = vsel %vm873_vm1, %v3769_v5, 0.0  ;;  %v3775_v11 = vld [vmem:[#allocation21_spill] sm:$0xff] }
 0x1af   : > { %v902_v17 = vsel %vm873_vm1, %v3274_v33, 0.0  ;;  %v973_v20 = vsel %vm873_vm1, %v3274_v33, -inf  ;;  %v1191_v46 = vmul.f32 %v3771_v53, %v3770_v63  ;;  %v1223_v31 = vmul.f32 %v3728_v42, %v3770_v63  ;;  %v3779_v32 = vld [vmem:[#allocation45_spill] sm:$0xff] }
 0x1b0   : > { %3766 = vst [vmem:[#allocation39_spill] sm:$0xff] %v3283_v60  ;;  %v1031_v15 = vmul.f32 1.442695, %v1027_v27  ;;  %v903_v59 = vadd.f32 %v902_v17, %v901_v55  ;;  %v974_v28 = vmax.f32 %v972_v38, %v973_v20  ;;  %v3302_v3 = vsel %vm873_vm1, %v3769_v5, -inf  ;;  %v3778_v38 = vld [vmem:[#allocation38_spill] sm:$0xff]  ;;  %v3784_v60 = vld [vmem:[#allocation35_spill] sm:$0xff] }
 0x1b1   : > { %3768 = vst [vmem:[#allocation43_spill] sm:$0xff] %v3286_v56  ;;  %v3306_v61 = vsel %vm873_vm1, %v3770_v63, 0.0  ;;  %v1192_v10 = vmul.f32 %v3270_v49, %v3772_v39  ;;  %v3311_v35 = vperm.slane %v3773_v9, 7  ;;  %v3314_v42 = vperm.slane %v3774_v36, 7 }
 0x1b2   : > { %1980 = vpow2.f32 %v1031_v15  ;;  %v942_v0 = vmul.f32 %v3201_v30, %v903_v59  ;;  %v913_v19 = vsel %vm873_vm1, %v843_v51, 0.0  ;;  %v3320_v41 = vsel %vm873_vm1, %v3770_v63, -inf  ;;  %v3781_v15 = vld [vmem:[#allocation36_spill] sm:$0xff] }
 0x1b3   : > { %v1255_v43 = vmul.f32 %v3729_v21, %v3770_v63  ;;  %v1287_v29 = vmul.f32 %v3733_v57, %v3770_v63  ;;  %v3327_v27 = vperm.slane %v3775_v11, 7  ;;  %v3330_v16 = vsel %vm873_vm1, %v1191_v46, 0.0  ;;  %v3780_v57 = vld [vmem:[#allocation33_spill] sm:$0xff]  ;;  %v3782_v11 = vld [vmem:[#allocation34_spill] sm:$0xff] }
 0x1b4   : > { %3776 = vst [vmem:[#allocation42_spill] sm:$0xff] %v3330_v16  ;;  %v3333_v55 = vsel %vm873_vm1, %v1223_v31, 0.0  ;;  %v1008_v44 = vmul.f32 %v3164_v47, %v942_v0  ;;  %v1014_v45 = vmul.f32 %v3778_v38, %v974_v28  ;;  %v914_v21 = vadd.f32 %v913_v19, %v3779_v32  ;;  %v3348_v31 = vpop.f32.mrf.mxu3 }
 0x1b5   : > { %3777 = vst [vmem:[#allocation24_spill] sm:$0xff] %v3333_v55  ;;  %v984_v24 = vsel %vm873_vm1, %v843_v51, -inf  ;;  %v1186_v5 = vmul.f32 %v3780_v57, %v843_v51  ;;  %v1218_v17 = vmul.f32 %v3781_v15, %v843_v51  ;;  %v1305_v20 = vsel %vm873_vm1, %v1192_v10, 0.0 }
 0x1b6   : > { %v1224_v63 = vmul.f32 %v3311_v35, %v3772_v39  ;;  %v1288_v53 = vmul.f32 %v3314_v42, %v3772_v39  ;;  %v1018_v46 = vadd.f32 %v1014_v45, %v1008_v44  ;;  %v1256_v28 = vmul.f32 %v3327_v27, %v3772_v39  ;;  %v3783_v45 = vld [vmem:[#allocation37_spill] sm:$0xff] }
 0x1b7   : > { %v1250_v9 = vmul.f32 %v3131_v1, %v843_v51  ;;  %v1282_v36 = vmul.f32 %v3134_v22, %v843_v51  ;;  %v1331_v0 = vsel %vm873_vm1, %v1186_v5, 0.0  ;;  %v985_v32 = vmax.f32 %v3782_v11, %v984_v24  ;;  %v3786_v11 = vld [vmem:[#allocation48_spill] sm:$0xff] }
 0x1b8   : > { %v1981_v59 = vpop.eup %1980  ;;  %v1024_v19 = vadd.f32 %v3221_v52, %v1018_v46  ;;  %v1391_v44 = vsel %vm873_vm1, %v1218_v17, 0.0  ;;  %v1306_v13 = vadd.f32 %v1305_v20, %v3783_v45  ;;  %v916_v39 = vadd.f32 %v3784_v60, %v914_v21  ;;  %v3785_v46 = vld [vmem:[#allocation47_spill] sm:$0xff]  ;;  %v3787_v60 = vld [vmem:[#allocation49_spill] sm:$0xff] }
 0x1b9   : > { %v3355_v10 = vadd.f32 1.0, %v1981_v59  ;;  %v1451_v56 = vsel %vm873_vm1, %v1250_v9, 0.0  ;;  %v917_v55 = vsel %vm873_vm1, %v3348_v31, 0.0  ;;  %v1365_v51 = vsel %vm873_vm1, %v1224_v63, 0.0 }
 0x1ba   : > { %v1485_v5 = vsel %vm873_vm1, %v1288_v53, 0.0  ;;  %v1332_v59 = vadd.f32 %v1331_v0, %v3785_v46  ;;  %v1028_v24 = vsub.f32 0.0, %v1024_v19  ;;  %v1392_v17 = vadd.f32 %v1391_v44, %v3786_v11 }
 0x1bb   : > { %1982 = vrcp.f32 %v3355_v10  ;;  %v1511_v20 = vsel %vm873_vm1, %v1282_v36, 0.0  ;;  %v918_v45 = vadd.f32 %v917_v55, %v916_v39  ;;  %v1425_v9 = vsel %vm873_vm1, %v1256_v28, 0.0  ;;  %v3788_v55 = vld [vmem:[#allocation50_spill] sm:$0xff] }
 0x1bc   : > { %v1452_v21 = vadd.f32 %v1451_v56, %v3787_v60  ;;  %v987_v16 = vmax.f32 %v985_v32, %v3244_v8  ;;  %v988_v34 = vsel %vm873_vm1, %v3348_v31, -inf  ;;  %v3377_v63 = vsel %vm873_vm1, %v1255_v43, 0.0  ;;  %v3386_v8 = vpop.permute.xlu2 %1546  ;;  %v3388_v32 = vpop.permute.xlu1 %1554 }
 0x1bd   : > { %v1366_v53 = vadd.f32 %v1365_v51, %v3207_v62  ;;  %v1033_v0 = vmul.f32 1.442695, %v1028_v24  ;;  %v943_v19 = vmul.f32 %v3201_v30, %v918_v45  ;;  %v1486_v36 = vadd.f32 %v1485_v5, %v3214_v4 }
 0x1be   : > { %v1512_v44 = vadd.f32 %v1511_v20, %v3788_v55  ;;  %v989_v28 = vmax.f32 %v987_v16, %v988_v34  ;;  %v3384_v56 = vadd.f32 %v3248_v25, %v1332_v59  ;;  %v1426_v43 = vadd.f32 %v1425_v9, %v3223_v54  ;;  %v3399_v25 = vpop.permute.xlu0 %1550 }
 0x1bf   : > { %1984 = vpow2.f32 %v1033_v0  ;;  %v1009_v62 = vmul.f32 %v3164_v47, %v943_v19  ;;  %v3393_v39 = vadd.f32 %v3252_v37, %v1392_v17  ;;  %v3396_v4 = vsel %vm873_vm1, %v1287_v29, 0.0  ;;  %v846_v17 = vpop.f32.mrf.mxu2 }
 0x1c0   : > { %v1557_v34 = vadd.f32 %v3337_v7, %v1306_v13  ;;  %v1015_v16 = vmul.f32 %v3778_v38, %v989_v28  ;;  %v3403_v5 = vadd.f32 %v3257_v2, %v1452_v21  ;;  %v1193_v46 = vmul.f32 %v3270_v49, %v3274_v33 }
 0x1c1   : > { %3789 = vst [vmem:[#allocation26_spill] sm:$0xff] %v3393_v39  ;;  %v1983_v51 = vpop.eup %1982  ;;  %v927_v37 = vadd.f32 %v3290_v12, %v3265_v50  ;;  %v3791_v29 = vmax.f32 %v3099_v40, %v3233_v23  ;;  %v1561_v59 = vadd.f32 %v3386_v8, %v1366_v53  ;;  %v1569_v24 = vadd.f32 %v3388_v32, %v1486_v36  ;;  %v3451_v39 = vpop.f32.mrf.mxu3 }
 0x1c2   : > { %3790 = vst [vmem:[#allocation25_spill] sm:$0xff] %v3403_v5  ;;  %v1044_v54 = vmul.f32 %v1983_v51, %v3355_v10  ;;  %v1019_v11 = vadd.f32 %v1015_v16, %v1009_v62  ;;  %v3417_v2 = vadd.f32 %v3261_v18, %v1512_v44  ;;  %v1052_v45 = vand.u32 2147483647, %v3355_v10  ;;  %v1577_v44 = vld [vmem:[%s2340_s10 + $0x20] sm:$0xff] }
 0x1c3   : > { %v998_v13 = vmax.f32 %v3791_v29, %v3302_v3  ;;  %v1565_v50 = vadd.f32 %v3399_v25, %v1426_v43  ;;  %v1225_v40 = vmul.f32 %v3311_v35, %v3274_v33  ;;  %v1054_v23 = vand.u32 2147483648, %v3355_v10  ;;  %v1585_v16 = vld [vmem:[%s2340_s10 + $0x60] sm:$0xff] }
 0x1c4   : > { %3792 = vst [vmem:[#allocation29_spill] sm:$0xff] %v3417_v2  ;;  %v1045_v20 = vsub.f32 1.0, %v1044_v54  ;;  %v3426_v12 = vmul.f32 %v3327_v27, %v3274_v33  ;;  %v3430_v18 = vmul.f32 %v3314_v42, %v3274_v33  ;;  %v1025_v3 = vadd.f32 %v3221_v52, %v1019_v11  ;;  %v1573_v33 = vld [vmem:[%s2340_s10] sm:$0xff] }
 0x1c5   : > { %v1985_v9 = vpop.eup %1984  ;;  %vm1049_vm3 = vweird.f32 %v1983_v51  ;;  %v1320_v21 = vsel %vm873_vm1, %v1193_v46, 0.0  ;;  %v1187_v53 = vmul.f32 %v3780_v57, %v846_v17  ;;  %v928_v36 = vsel %vm873_vm1, %v846_v17, 0.0  ;;  %v1581_v54 = vld [vmem:[%s2340_s10 + $0x40] sm:$0xff] }
 0x1c6   : > { %v1046_v60 = vmul.f32 %v1983_v51, %v1045_v20  ;;  %v3435_v0 = vadd.f32 1.0, %v1985_v9  ;;  %v1029_v19 = vsub.f32 0.0, %v1025_v3  ;;  %v1219_v55 = vmul.f32 %v3781_v15, %v846_v17 }
 0x1c7   : > { %vm1048_vm4 = vweird.f32 %v3355_v10  ;;  %vm1053_vm5 = vcmp.eq.f32.partialorder %v1052_v45, 8.507059e+37  ;;  %v999_v43 = vsel %vm873_vm1, %v846_v17, -inf  ;;  %v1055_v62 = vor.u32 1.1754944e-38, %v1054_v23 }
 0x1c8   : > { %v1047_v28 = vadd.f32 %v1983_v51, %v1046_v60  ;;  %vm1050_vm6 = vmor %vm1048_vm4, %vm1049_vm3  ;;  %1986 = vrcp.f32 %v3435_v0  ;;  %v1251_v57 = vmul.f32 %v3131_v1, %v846_v17  ;;  %v1283_v46 = vmul.f32 %v3134_v22, %v846_v17 }
 0x1c9   : > { %v1035_v15 = vmul.f32 1.442695, %v1029_v19  ;;  %v929_v11 = vadd.f32 %v928_v36, %v927_v37  ;;  %v1346_v20 = vsel %vm873_vm1, %v1187_v53, 0.0  ;;  %v1380_v10 = vsel %vm873_vm1, %v1225_v40, 0.0 }
 0x1ca   : > { %v1051_v29 = vsel %vm1050_vm6, %v1983_v51, %v1047_v28  ;;  %v1000_v45 = vmax.f32 %v998_v13, %v999_v43  ;;  %v1406_v9 = vsel %vm873_vm1, %v1219_v55, 0.0  ;;  %v1347_v1 = vadd.f32 %v1346_v20, %v3211_v6 }
 0x1cb   : > { %v1056_v3 = vsel %vm1053_vm5, %v1055_v62, %v1051_v29  ;;  %1988 = vpow2.f32 %v1035_v15  ;;  %v1466_v22 = vsel %vm873_vm1, %v1251_v57, 0.0  ;;  %v1526_v51 = vsel %vm873_vm1, %v1283_v46, 0.0  ;;  %v3796_v46 = vld [vmem:[#allocation39_spill] sm:$0xff] }
 0x1cc   : > { %v1589_v23 = vmul.f32 %v1573_v33, %v1056_v3  ;;  %v1593_v60 = vmul.f32 %v1577_v44, %v1056_v3  ;;  %v1601_v2 = vmul.f32 %v1585_v16, %v1056_v3  ;;  %v1597_v5 = vmul.f32 %v1581_v54, %v1056_v3  ;;  %v3795_v16 = vld [vmem:[#allocation24_spill] sm:$0xff]  ;;  %v1574_v3 = vld [vmem:[%s2340_s10 + $0x8] sm:$0xff] }
 0x1cd   : > { %v931_v13 = vadd.f32 %v3306_v61, %v929_v11  ;;  %v1407_v36 = vadd.f32 %v1406_v9, %v3218_v26  ;;  %v932_v55 = vsel %vm873_vm1, %v3451_v39, 0.0  ;;  %v1002_v33 = vmax.f32 %v1000_v45, %v3320_v41 }
 0x1ce   : > { %v1605_v37 = vadd.f32 %v1589_v23, %v1557_v34  ;;  %v1609_v17 = vadd.f32 %v1593_v60, %v1561_v59  ;;  %v1617_v40 = vadd.f32 %v1601_v2, %v1569_v24  ;;  %v1987_v53 = vpop.eup %1986  ;;  %v1613_v19 = vadd.f32 %v1597_v5, %v1565_v50  ;;  %v3793_v59 = vld [vmem:[#allocation20_spill] sm:$0xff]  ;;  %v1582_v23 = vld [vmem:[%s2340_s10 + $0x48] sm:$0xff] }
 0x1cf   : > { %v1059_v6 = vmul.f32 %v1987_v53, %v3435_v0  ;;  %v1321_v61 = vadd.f32 %v1320_v21, %v3277_v48  ;;  %v933_v34 = vadd.f32 %v932_v55, %v931_v13  ;;  %v1003_v26 = vsel %vm873_vm1, %v3451_v39, -inf  ;;  %v3794_v21 = vld [vmem:[#allocation42_spill] sm:$0xff]  ;;  %v1586_v60 = vld [vmem:[%s2340_s10 + $0x68] sm:$0xff] }
 0x1d0   : > { %1621 = vst.msk [vmem:[%s3462_s13] sm:$0xff] %vm873_vm1, %v1605_v37  ;;  %v1381_v41 = vadd.f32 %v1380_v10, %v3280_v58  ;;  %v1467_v5 = vadd.f32 %v1466_v22, %v3226_v14  ;;  %v1527_v24 = vadd.f32 %v1526_v51, %v3793_v59  ;;  %v1004_v2 = vmax.f32 %v1002_v33, %v1003_v26  ;;  %v1578_v10 = vld [vmem:[%s2340_s10 + $0x28] sm:$0xff] }
 0x1d1   : > { %1625 = vst.msk [vmem:[%s3462_s13 + $0x20] sm:$0xff] %vm873_vm1, %v1609_v17  ;;  %v1060_v50 = vsub.f32 1.0, %v1059_v6  ;;  %v1440_v44 = vsel %vm873_vm1, %v3426_v12, 0.0  ;;  %v944_v48 = vmul.f32 %v3201_v30, %v933_v34  ;;  %v3481_v28 = vadd.f32 %v3794_v21, %v1347_v1  ;;  %v1989_v43 = vpop.eup %1988 }
 0x1d2   : > { %1633 = vst.msk [vmem:[%s3462_s13 + $0x60] sm:$0xff] %vm873_vm1, %v1617_v40  ;;  %v1067_v14 = vand.u32 2147483647, %v3435_v0  ;;  %v1069_v58 = vand.u32 2147483648, %v3435_v0  ;;  %v1500_v62 = vsel %vm873_vm1, %v3430_v18, 0.0  ;;  %v3490_v54 = vadd.f32 %v3795_v16, %v1407_v36  ;;  %v3799_v16 = vld [vmem:[#allocation25_spill] sm:$0xff] }
 0x1d3   : > { %1629 = vst.msk [vmem:[%s3462_s13 + $0x40] sm:$0xff] %vm873_vm1, %v1613_v19  ;;  %v1061_v12 = vmul.f32 %v1987_v53, %v1060_v50  ;;  %vm1064_vm7 = vweird.f32 %v1987_v53  ;;  %v3492_v30 = vadd.f32 1.0, %v1989_v43  ;;  %v1010_v57 = vmul.f32 %v3164_v47, %v944_v48  ;;  %v3797_v47 = vld [vmem:[#allocation43_spill] sm:$0xff] }
 0x1d4   : > { %v1441_v29 = vadd.f32 %v1440_v44, %v3796_v46  ;;  %v1016_v15 = vmul.f32 %v3778_v38, %v1004_v2  ;;  %v3498_v11 = vadd.f32 %v3377_v63, %v1467_v5  ;;  %v3501_v18 = vadd.f32 %v3396_v4, %v1527_v24  ;;  %v1575_v46 = vld [vmem:[%s2340_s10 + $0x10] sm:$0xff] }
 0x1d5   : > { %v1062_v20 = vadd.f32 %v1987_v53, %v1061_v12  ;;  %vm1063_vm8 = vweird.f32 %v3435_v0  ;;  %1990 = vrcp.f32 %v3492_v30  ;;  %v1070_v45 = vor.u32 1.1754944e-38, %v1069_v58  ;;  %v3798_v58 = vld [vmem:[#allocation26_spill] sm:$0xff] }
 0x1d6   : > { %vm1065_vm9 = vmor %vm1063_vm8, %vm1064_vm7  ;;  %v1501_v9 = vadd.f32 %v1500_v62, %v3797_v47  ;;  %v1020_v38 = vadd.f32 %v1016_v15, %v1010_v57  ;;  %vm1068_vm10 = vcmp.eq.f32.partialorder %v1067_v14, 8.507059e+37  ;;  %v1558_v63 = vadd.f32 %v3337_v7, %v1321_v61  ;;  %v3800_v15 = vld [vmem:[#allocation29_spill] sm:$0xff] }
 0x1d7   : > { %v1066_v1 = vsel %vm1065_vm9, %v1987_v53, %v1062_v20  ;;  %v1562_v4 = vadd.f32 %v3386_v8, %v1381_v41  ;;  %v1566_v0 = vadd.f32 %v3399_v25, %v1441_v29  ;;  %v1194_v51 = vmul.f32 %v3270_v49, %v3348_v31  ;;  %v1579_v29 = vld [vmem:[%s2340_s10 + $0x30] sm:$0xff] }
 0x1d8   : > { %v1071_v22 = vsel %vm1068_vm10, %v1070_v45, %v1066_v1  ;;  %v1026_v37 = vadd.f32 %v3221_v52, %v1020_v38  ;;  %v1570_v53 = vadd.f32 %v3388_v32, %v1501_v9  ;;  %v1226_v36 = vmul.f32 %v3311_v35, %v3348_v31 }
 0x1d9   : > { %v1590_v17 = vmul.f32 %v1574_v3, %v1071_v22  ;;  %v1594_v40 = vmul.f32 %v1578_v10, %v1071_v22  ;;  %v1598_v13 = vmul.f32 %v1582_v23, %v1071_v22  ;;  %v1602_v19 = vmul.f32 %v1586_v60, %v1071_v22  ;;  %v1583_v3 = vld [vmem:[%s2340_s10 + $0x50] sm:$0xff] }
 0x1da   : > { %v1258_v55 = vmul.f32 %v3327_v27, %v3348_v31  ;;  %v1030_v33 = vsub.f32 0.0, %v1026_v37  ;;  %v1290_v26 = vmul.f32 %v3314_v42, %v3348_v31  ;;  %v1335_v59 = vsel %vm873_vm1, %v1194_v51, 0.0  ;;  %v1587_v10 = vld [vmem:[%s2340_s10 + $0x70] sm:$0xff] }
 0x1db   : > { %v1991_v6 = vpop.eup %1990  ;;  %v1606_v61 = vadd.f32 %v1590_v17, %v1558_v63  ;;  %v1610_v34 = vadd.f32 %v1594_v40, %v1562_v4  ;;  %v1614_v52 = vadd.f32 %v1598_v13, %v1566_v0  ;;  %v1618_v41 = vadd.f32 %v1602_v19, %v1570_v53 }
 0x1dc   : > { %v1074_v5 = vmul.f32 %v1991_v6, %v3492_v30  ;;  %v1037_v24 = vmul.f32 1.442695, %v1030_v33  ;;  %v1395_v50 = vsel %vm873_vm1, %v1226_v36, 0.0  ;;  %v1455_v44 = vsel %vm873_vm1, %v1258_v55, 0.0 }
 0x1dd   : > { %1622 = vst.msk [vmem:[%s3462_s13 + $0x8] sm:$0xff] %vm873_vm1, %v1606_v61  ;;  %v1084_v31 = vand.u32 2147483648, %v3492_v30  ;;  %v1336_v48 = vadd.f32 %v1335_v59, %v3384_v56  ;;  %vm1079_vm11 = vweird.f32 %v1991_v6  ;;  %v1082_v43 = vand.u32 2147483647, %v3492_v30  ;;  %v1576_v59 = vld [vmem:[%s2340_s10 + $0x18] sm:$0xff] }
 0x1de   : > { %1626 = vst.msk [vmem:[%s3462_s13 + $0x28] sm:$0xff] %vm873_vm1, %v1610_v34  ;;  %v1075_v2 = vsub.f32 1.0, %v1074_v5  ;;  %1992 = vpow2.f32 %v1037_v24  ;;  %v1515_v14 = vsel %vm873_vm1, %v1290_v26, 0.0  ;;  %v1396_v62 = vadd.f32 %v1395_v50, %v3798_v58  ;;  %v1580_v24 = vld [vmem:[%s2340_s10 + $0x38] sm:$0xff] }
 0x1df   : > { %1630 = vst.msk [vmem:[%s3462_s13 + $0x48] sm:$0xff] %vm873_vm1, %v1614_v52  ;;  %v1456_v12 = vadd.f32 %v1455_v44, %v3799_v16  ;;  %vm1078_vm12 = vweird.f32 %v3492_v30  ;;  %v1085_v56 = vor.u32 1.1754944e-38, %v1084_v31  ;;  %v1516_v20 = vadd.f32 %v1515_v14, %v3800_v15  ;;  %v1584_v44 = vld [vmem:[%s2340_s10 + $0x58] sm:$0xff] }
 0x1e0   : > { %1634 = vst.msk [vmem:[%s3462_s13 + $0x68] sm:$0xff] %vm873_vm1, %v1618_v41  ;;  %v1076_v21 = vmul.f32 %v1991_v6, %v1075_v2  ;;  %vm1080_vm13 = vmor %vm1078_vm12, %vm1079_vm11  ;;  %vm1083_vm14 = vcmp.eq.f32.partialorder %v1082_v43, 8.507059e+37  ;;  %v1559_v9 = vadd.f32 %v3337_v7, %v1336_v48  ;;  %v1563_v60 = vadd.f32 %v3386_v8, %v1396_v62  ;;  %v1588_v31 = vld [vmem:[%s2340_s10 + $0x78] sm:$0xff]  ;;  %s1654_s10 = sshll.u32 %s1651_s20, 4  ;;  %s1655_s10 = int_to_ptr.hbm [resolvable:$true] %s1654_s10 }
 0x1e1   : > { %v1567_v30 = vadd.f32 %v3399_v25, %v1456_v12  ;;  %v1571_v0 = vadd.f32 %v3388_v32, %v1516_v20  ;;  %v1195_v13 = vmul.f32 %v3270_v49, %v3451_v39  ;;  %v1227_v19 = vmul.f32 %v3311_v35, %v3451_v39  ;;  %s2085_s8 = sshra.s32 %s1655_s10, 4  ;;  %s2086_s8 = int_to_ptr.hbm [resolvable:$true] %s2085_s8 }
 0x1e2   : > { %v1077_v57 = vadd.f32 %v1991_v6, %v1076_v21  ;;  %v1259_v53 = vmul.f32 %v3327_v27, %v3451_v39  ;;  %v1291_v33 = vmul.f32 %v3314_v42, %v3451_v39  ;;  %s2087_s16 = scalar_lea.hbm %s2086_s8, 128  ;;  %p2092_p11 = scmp.lt.s32.totalorder %s2086_s8, %s3637_s7 }
 0x1e3   : > { %v1350_v61 = vsel %vm873_vm1, %v1195_v13, 0.0  ;;  %v1410_v49 = vsel %vm873_vm1, %v1227_v19, 0.0  ;;  %p2088_p3 = scmp.ne.s32.totalorder %s2086_s8, %s2087_s16  ;;  %p2093_p12 = scmp.lt.s32.totalorder %s2091_s30, %s2087_s16 }
 0x1e4   : > { %v1993_v45 = vpop.eup %1992  ;;  %v1081_v47 = vsel %vm1080_vm13, %v1991_v6, %v1077_v57  ;;  %v1470_v35 = vsel %vm873_vm1, %v1259_v53, 0.0  ;;  %v1530_v26 = vsel %vm873_vm1, %v1291_v33, 0.0  ;;  %v1351_v41 = vadd.f32 %v1350_v61, %v3481_v28 }
 0x1e5   : > { %v1086_v23 = vsel %vm1083_vm14, %v1085_v56, %v1081_v47  ;;  %v1042_v38 = vadd.f32 1.0, %v1993_v45  ;;  %v1411_v42 = vadd.f32 %v1410_v49, %v3490_v54  ;;  %v1471_v39 = vadd.f32 %v1470_v35, %v3498_v11  ;;  %p2089_p7 = pnand %p2088_p3, %p2262_p8  ;;  %p2094_p0 = por %p2093_p12, %p2092_p11 }
 0x1e6   : > { %v1591_v1 = vmul.f32 %v1575_v46, %v1086_v23  ;;  %v1595_v63 = vmul.f32 %v1579_v29, %v1086_v23  ;;  %v1599_v4 = vmul.f32 %v1583_v3, %v1086_v23  ;;  %v1603_v22 = vmul.f32 %v1587_v10, %v1086_v23 }
 0x1e7   : > { %1994 = vrcp.f32 %v1042_v38  ;;  %v1099_v34 = vand.u32 2147483648, %v1042_v38  ;;  %v1097_v52 = vand.u32 2147483647, %v1042_v38  ;;  %vm1093_vm0 = vweird.f32 %v1042_v38  ;;  %p2090_p10 = pneg %p2089_p7 }
 0x1e8   : > { %v1607_v51 = vadd.f32 %v1591_v1, %v1559_v9  ;;  %v1611_v37 = vadd.f32 %v1595_v63, %v1563_v60  ;;  %v1615_v17 = vadd.f32 %v1599_v4, %v1567_v30  ;;  %v1619_v40 = vadd.f32 %v1603_v22, %v1571_v0 }
 0x1e9   : > { %v1100_v2 = vor.u32 1.1754944e-38, %v1099_v34  ;;  %v1531_v50 = vadd.f32 %v1530_v26, %v3501_v18  ;;  %vm1098_vm3 = vcmp.eq.f32.partialorder %v1097_v52, 8.507059e+37  ;;  %v1560_v54 = vadd.f32 %v3337_v7, %v1351_v41  ;;  %p2095_p1 = pnand %p2094_p0, %p2090_p10 }
 0x1ea   : > { %1623 = vst.msk [vmem:[%s3462_s13 + $0x10] sm:$0xff] %vm873_vm1, %v1607_v51  ;;  %v1564_v11 = vadd.f32 %v3386_v8, %v1411_v42  ;;  %v1568_v21 = vadd.f32 %v3399_v25, %v1471_v39 }
 0x1eb   : > { %1627 = vst.msk [vmem:[%s3462_s13 + $0x30] sm:$0xff] %vm873_vm1, %v1611_v37  ;;  %v1572_v62 = vadd.f32 %v3388_v32, %v1531_v50 }
 0x1ec   : > { %1631 = vst.msk [vmem:[%s3462_s13 + $0x50] sm:$0xff] %vm873_vm1, %v1615_v17 }
 0x1ed   : > { %v1995_v36 = vpop.eup %1994  ;;  %1635 = vst.msk [vmem:[%s3462_s13 + $0x70] sm:$0xff] %vm873_vm1, %v1619_v40 }
 0x1ee   : > { %v1089_v55 = vmul.f32 %v1995_v36, %v1042_v38  ;;  %vm1094_vm15 = vweird.f32 %v1995_v36 }
 0x1ef   : > { %vm1095_vm2 = vmor %vm1093_vm0, %vm1094_vm15 }
 0x1f0   : > { %v1090_v6 = vsub.f32 1.0, %v1089_v55 }
 0x1f2   : > { %v1091_v27 = vmul.f32 %v1995_v36, %v1090_v6 }
 0x1f4   : > { %v1092_v5 = vadd.f32 %v1995_v36, %v1091_v27 }
 0x1f6   : > { %v1096_v48 = vsel %vm1095_vm2, %v1995_v36, %v1092_v5 }
 0x1f7   : > { %v1101_v28 = vsel %vm1098_vm3, %v1100_v2, %v1096_v48 }
 0x1f8   : > { %v1592_v43 = vmul.f32 %v1576_v59, %v1101_v28  ;;  %v1596_v18 = vmul.f32 %v1580_v24, %v1101_v28  ;;  %v1600_v14 = vmul.f32 %v1584_v44, %v1101_v28  ;;  %v1604_v58 = vmul.f32 %v1588_v31, %v1101_v28 }
 0x1fa   : > { %v1608_v16 = vadd.f32 %v1592_v43, %v1560_v54  ;;  %v1612_v12 = vadd.f32 %v1596_v18, %v1564_v11  ;;  %v1616_v7 = vadd.f32 %v1600_v14, %v1568_v21  ;;  %v1620_v57 = vadd.f32 %v1604_v58, %v1572_v62 }
 0x1fc   : > { %1624 = vst.msk [vmem:[%s3462_s13 + $0x18] sm:$0xff] %vm873_vm1, %v1608_v16 }
 0x1fd   : > { %1628 = vst.msk [vmem:[%s3462_s13 + $0x38] sm:$0xff] %vm873_vm1, %v1612_v12 }
 0x1fe   : > { %1632 = vst.msk [vmem:[%s3462_s13 + $0x58] sm:$0xff] %vm873_vm1, %v1616_v7 }
 0x1ff   : > { %1636 = vst.msk [vmem:[%s3462_s13 + $0x78] sm:$0xff] %vm873_vm1, %v1620_v57 }
 0x200   : > { %2098 = shalt.err (!%p2095_p1)
}
 0x201   : > { %s2168_s0 = smov 128   ;;  %s2169_s9 = smov 8  }
 0x202   : > { %1897 = dma.vmem_to_hbm [thread:$0]  (%p2262_p8), %s1653_s27, 2048, %s1655_s10, %s1638_s23, %s2168_s0, %s2168_s0, %s2169_s9  }
 0x203 PF: > { %s3802_s29 = sld [smem:[#allocation14_spill]]  ;;  %p1911_p2 = pnand %p1797_p13, %p2266_p9 }
 0x204   : > { %s3804_s28 = sld [smem:[#allocation16_spill]] }
 0x205   : > { %p1912_p4 = pneg %p1911_p2 }
 0x209   : > { %s1669_s12 = sand.u32 1, %s3802_s29  }
 0x20a   : > { %s1670_s13 = scalar_lea.sflag [#allocation4], %s1669_s12 }
 0x20b   : > { %2136 = dma.done.wait (%p1912_p4), %s1670_s13, 2048  }
 0x20c   : > { %2138 = vsyncadd (%p1912_p4), %s1670_s13, 4294965248  ;;  %s27_s29 = sadd.s32 1, %s3804_s28   ;;  %s3805_s27 = sld [smem:[#allocation15_spill]] }
 0x20d   : > { %p24_p6 = scmp.ge.s32.totalorder %s27_s29, 4   ;;  %s3806_s28 = sld [smem:[#allocation19_spill]] }
 0x20e   : > { %s3807_s24 = smov %s2145_s25  ;;  %s3808_s25 = smov %s2149_s26 }
 0x20f   : > { %s3809_s26 = smov %s2307_s14  ;;  %26 = sbr.rel (!%p24_p6) target bundleno = 12 (0xc), region = 114 }
 0x214   :  { %1676 = vsyncpa [#allocation3], 1 }
 0x215   :  { %1678 = vsyncpa [#allocation3 + $0x1], 1 }
 0x216   :  { %1679 = vsyncpa [#allocation8], 1 }
 0x217   :  { %1681 = vsyncpa [#allocation8 + $0x1], 1 }
 0x218   :  { %1682 = vsyncpa [#allocation4], 1 }
 0x219   :  { %1684 = vsyncpa [#allocation4 + $0x1], 1 }
 0x21a   :  { %1685 = vsyncpa [#allocation5], 1 }
 0x21b   :  { %1687 = vsyncpa [#allocation5 + $0x1], 1 }

</bundles_post_ra>
